<compile_context>
chip_gen: v5e
topology: v5e:2x2
jax: 0.10.0
libtpu: 0.0.40
codegen_flags: <defaults>
</compile_context>

<pallas_src>
import functools

import numpy as np
import jax
import jax.numpy as jnp
from jax.experimental import pallas as pl
from jax.experimental.pallas import tpu as pltpu

# ---- BaseEncoderConfig defaults -------------------------------------------
N_FFT = 512
WIN_LENGTH = 400
HOP_LENGTH = 160
N_MELS = 40
SAMPLE_RATE = 16000
N_FREQS = N_FFT // 2 + 1        # 257 rfft bins
N_FREQS_KEPT = N_FFT // 2       # 256: drop Nyquist bin (its mel fb row is ~0)
N_MELS_PAD = 128                # pad mel axis to one full lane group (zero cols)
LOG_EPS = 1e-6
IN_EPS = 1e-5                   # nn.InstanceNorm1d default eps


# ---- deterministic "parameters" (fixed transform matrices) -----------------
def _hamming_window(win_length: int) -> np.ndarray:
    # torch.hamming_window(win_length, periodic=True)
    n = np.arange(win_length, dtype=np.float64)
    return 0.54 - 0.46 * np.cos(2.0 * np.pi * n / win_length)


def _dft_matrix() -> np.ndarray:
    """Fused windowed rDFT matrix [cos | -sin], shape (n_fft, 2*N_FREQS_KEPT)."""
    win = _hamming_window(WIN_LENGTH)
    pad_l = (N_FFT - WIN_LENGTH) // 2
    window = np.zeros(N_FFT, dtype=np.float64)
    window[pad_l:pad_l + WIN_LENGTH] = win

    n = np.arange(N_FFT, dtype=np.float64)[:, None]
    k = np.arange(N_FREQS_KEPT, dtype=np.float64)[None, :]
    ang = 2.0 * np.pi * n * k / N_FFT
    cos_m = window[:, None] * np.cos(ang)        # real part
    sin_m = -window[:, None] * np.sin(ang)       # imag part (sign irrelevant for power)
    return np.concatenate([cos_m, sin_m], axis=1).astype(np.float32)   # (512, 512)


def _mel_fbanks() -> np.ndarray:
    """HTK mel filterbank (norm=None); Nyquist row dropped, mel axis padded to 128."""
    f_min, f_max = 0.0, SAMPLE_RATE / 2.0
    all_freqs = np.linspace(0.0, SAMPLE_RATE // 2, N_FREQS)

    def hz_to_mel(f):
        return 2595.0 * np.log10(1.0 + f / 700.0)

    def mel_to_hz(m):
        return 700.0 * (10.0 ** (m / 2595.0) - 1.0)

    m_pts = np.linspace(hz_to_mel(f_min), hz_to_mel(f_max), N_MELS + 2)
    f_pts = mel_to_hz(m_pts)
    f_diff = f_pts[1:] - f_pts[:-1]
    slopes = f_pts[None, :] - all_freqs[:, None]          # (n_freqs, n_mels+2)
    down = -slopes[:, :-2] / f_diff[:-1]
    up = slopes[:, 2:] / f_diff[1:]
    fb = np.maximum(0.0, np.minimum(down, up))            # (257, n_mels)

    fb_p = np.zeros((N_FREQS_KEPT, N_MELS_PAD), dtype=np.float64)
    fb_p[:, :N_MELS] = fb[:N_FREQS_KEPT, :]               # Nyquist row (~0) dropped
    return fb_p.astype(np.float32)                        # (256, 128)


# ---- Pallas kernel ----------------------------------------------------------
def _encoder_kernel(frames_ref, dft_ref, fb_ref, out_ref, *, b_tile, t_frames, t_pad):
    frames = frames_ref[...]                                   # (b_tile*t_pad, n_fft)
    # Windowed rDFT: single fused [cos|sin] matmul on the MXU (f32 accumulate).
    spec = jnp.dot(frames, dft_ref[...], preferred_element_type=jnp.float32)
    re = spec[:, :N_FREQS_KEPT]
    im = spec[:, N_FREQS_KEPT:]
    power = re * re + im * im                                  # (M, 256), power=2.0
    # Mel projection (mel axis zero-padded to a full 128-lane group).
    mel = jnp.dot(power, fb_ref[...], preferred_element_type=jnp.float32)   # (M, 128)
    # (M, 128) -> (128, M): aligned in-kernel transpose so the store is (n_mels, T).
    logmel_t = jnp.transpose(jnp.log(mel + LOG_EPS))
    # InstanceNorm1d (affine=False): per sample, per mel channel, over its T frames.
    for s in range(b_tile):
        lm = logmel_t[:N_MELS, s * t_pad:s * t_pad + t_frames]   # (n_mels, T) valid frames
        mean = jnp.mean(lm, axis=1, keepdims=True)
        centered = lm - mean
        var = jnp.mean(centered * centered, axis=1, keepdims=True)   # biased variance
        out_ref[s] = centered * jax.lax.rsqrt(var + IN_EPS)


# ---- wrapper ----------------------------------------------------------------
def _choose_batch_tile(n: int, rows_per_sample: int, target_rows: int = 128) -> int:
    """Smallest divisor of n whose tile reaches `target_rows` MXU rows; else n."""
    for b in range(1, n + 1):
        if n % b == 0 and b * rows_per_sample >= target_rows:
            return b
    return n


def base_encoder_forward(x: jnp.ndarray) -> jnp.ndarray:
    """x: (N, L) float32 waveform -> (N, n_mels, T) float32 (PyTorch layout)."""
    n, length = x.shape
    pad = N_FFT // 2
    xp = jnp.pad(x, ((0, 0), (pad, pad)), mode="reflect")      # center=True, reflect
    t_frames = 1 + length // HOP_LENGTH
    t_pad = -(-t_frames // 8) * 8                              # sublane-align frame count

    # Frame gather (XLA glue). Padded frame slots re-read frame 0; they are
    # computed in-kernel but excluded from the norm statistics and never stored.
    # TODO(synk): build frames in-kernel from the padded waveform (strided pl.ds
    # reads / manual DMA) to avoid the ~n_fft/hop x duplicated frames tensor in HBM.
    frame_idx = jnp.arange(t_pad)
    frame_idx = jnp.where(frame_idx < t_frames, frame_idx, 0)
    idx = frame_idx[:, None] * HOP_LENGTH + jnp.arange(N_FFT)[None, :]
    frames = xp[:, idx].astype(jnp.float32)                    # (N, t_pad, n_fft)
    frames = frames.reshape(n * t_pad, N_FFT)                  # flatten batch x time

    dft = jnp.asarray(_dft_matrix())                           # (512, 512) fused cos|sin
    fb = jnp.asarray(_mel_fbanks())                            # (256, 128)

    b_tile = _choose_batch_tile(n, t_pad)
    rows = b_tile * t_pad                                      # multiple of 8
    grid = (n // b_tile,)

    kernel = functools.partial(_encoder_kernel, b_tile=b_tile,
                               t_frames=t_frames, t_pad=t_pad)

    # TODO(synk): for very long audio (per-sample tile approaching the scoped
    # VMEM limit, esp. on v7x), add a time grid axis with a two-pass/streaming
    # (sum, sum-of-squares) instance norm instead of one whole-sample tile.
    out = pl.pallas_call(
        kernel,
        out_shape=jax.ShapeDtypeStruct((n, N_MELS, t_frames), jnp.float32),
        grid_spec=pltpu.PrefetchScalarGridSpec(
            num_scalar_prefetch=0,
            grid=grid,
            in_specs=[
                pl.BlockSpec((rows, N_FFT), lambda i: (i, 0)),
                pl.BlockSpec((N_FFT, 2 * N_FREQS_KEPT), lambda i: (0, 0)),
                pl.BlockSpec((N_FREQS_KEPT, N_MELS_PAD), lambda i: (0, 0)),
            ],
            out_specs=pl.BlockSpec((b_tile, N_MELS, t_frames), lambda i: (i, 0, 0)),
        ),
        compiler_params=pltpu.CompilerParams(dimension_semantics=("parallel",)),
    )(frames, dft, fb)
    return out                                                 # already (N, n_mels, T)


if __name__ == "__main__":
    key = jax.random.PRNGKey(0)
    batch, length = 2, 3200                      # (N, L) waveform; T = 1 + 3200//160 = 21
    x = jax.random.normal(key, (batch, length), dtype=jnp.float32)

    fwd = jax.jit(base_encoder_forward)
    z = fwd(x)
    jax.block_until_ready(z)
    assert z.shape == (batch, N_MELS, 1 + length // HOP_LENGTH)
    assert bool(jnp.all(jnp.isfinite(z)))
    print("KERNEL_OK")
</pallas_src>

<mosaic_0001>
module attributes {stable_mosaic.version = 11 : i64} {
  func.func @_encoder_kernel(%arg0: i32, %arg1: memref<48x512xf32, #tpu.memory_space<vmem>>, %arg2: memref<512x512xf32, #tpu.memory_space<vmem>>, %arg3: memref<256x128xf32, #tpu.memory_space<vmem>>, %arg4: memref<2x40x21xf32, #tpu.memory_space<vmem>>) attributes {dimension_semantics = [#tpu.dimension_semantics<parallel>], iteration_bounds = array<i64: 1>, scalar_prefetch = 0 : i64, scratch_operands = 0 : i64, tpu.core_type = #tpu.core_type<tc>, window_params = [{transform_indices = @transform_0, window_bounds = array<i64: 48, 512>}, {pipeline_mode = #tpu.pipeline_mode<synchronous>, transform_indices = @transform_1, window_bounds = array<i64: 512, 512>}, {pipeline_mode = #tpu.pipeline_mode<synchronous>, transform_indices = @transform_2, window_bounds = array<i64: 256, 128>}, {transform_indices = @transform_3, window_bounds = array<i64: 2, 40, 21>}]} {
    %c0 = arith.constant 0 : index
    %c0_0 = arith.constant 0 : index
    %0 = vector.load %arg1[%c0, %c0_0] : memref<48x512xf32, #tpu.memory_space<vmem>>, vector<48x512xf32>
    %c0_1 = arith.constant 0 : index
    %c0_2 = arith.constant 0 : index
    %1 = vector.load %arg2[%c0_1, %c0_2] : memref<512x512xf32, #tpu.memory_space<vmem>>, vector<512x512xf32>
    %cst = arith.constant dense<0.000000e+00> : vector<48x512xf32>
    %2 = tpu.matmul %0, %1, %cst {dimension_numbers = #tpu.dot_dimension_numbers<[1], [0], [0], [1], [0, 0, 1, 1], [], []>} : vector<48x512xf32>, vector<512x512xf32>, vector<48x512xf32> -> vector<48x512xf32>
    %3 = vector.extract_strided_slice %2 {offsets = [0, 0], sizes = [48, 256], strides = [1, 1]} : vector<48x512xf32> to vector<48x256xf32>
    %4 = vector.extract_strided_slice %2 {offsets = [0, 256], sizes = [48, 256], strides = [1, 1]} : vector<48x512xf32> to vector<48x256xf32>
    %5 = arith.mulf %3, %3 : vector<48x256xf32>
    %6 = arith.mulf %4, %4 : vector<48x256xf32>
    %7 = arith.addf %5, %6 : vector<48x256xf32>
    %c0_3 = arith.constant 0 : index
    %c0_4 = arith.constant 0 : index
    %8 = vector.load %arg3[%c0_3, %c0_4] : memref<256x128xf32, #tpu.memory_space<vmem>>, vector<256x128xf32>
    %cst_5 = arith.constant dense<0.000000e+00> : vector<48x128xf32>
    %9 = tpu.matmul %7, %8, %cst_5 {dimension_numbers = #tpu.dot_dimension_numbers<[1], [0], [0], [1], [0, 0, 1, 1], [], []>} : vector<48x256xf32>, vector<256x128xf32>, vector<48x128xf32> -> vector<48x128xf32>
    %cst_6 = arith.constant 9.99999997E-7 : f32
    %10 = vector.broadcast %cst_6 : f32 to vector<48x128xf32>
    %11 = arith.addf %9, %10 : vector<48x128xf32>
    %12 = math.log %11 : vector<48x128xf32>
    %13 = tpu.transpose %12, [1, 0] : vector<48x128xf32> -> vector<128x48xf32>
    %14 = vector.extract_strided_slice %13 {offsets = [0, 0], sizes = [40, 21], strides = [1, 1]} : vector<128x48xf32> to vector<40x21xf32>
    %cst_7 = arith.constant dense<0.000000e+00> : vector<40xf32>
    %15 = vector.multi_reduction <add>, %14, %cst_7 [1] : vector<40x21xf32> to vector<40xf32>
    %16 = vector.shape_cast %15 : vector<40xf32> to vector<40x1xf32>
    %cst_8 = arith.constant 2.100000e+01 : f32
    %17 = vector.broadcast %cst_8 : f32 to vector<40x1xf32>
    %18 = arith.divf %16, %17 : vector<40x1xf32>
    %19 = vector.broadcast %18 : vector<40x1xf32> to vector<40x21xf32>
    %20 = arith.subf %14, %19 : vector<40x21xf32>
    %21 = arith.mulf %20, %20 : vector<40x21xf32>
    %cst_9 = arith.constant dense<0.000000e+00> : vector<40xf32>
    %22 = vector.multi_reduction <add>, %21, %cst_9 [1] : vector<40x21xf32> to vector<40xf32>
    %23 = vector.shape_cast %22 : vector<40xf32> to vector<40x1xf32>
    %cst_10 = arith.constant 2.100000e+01 : f32
    %24 = vector.broadcast %cst_10 : f32 to vector<40x1xf32>
    %25 = arith.divf %23, %24 : vector<40x1xf32>
    %cst_11 = arith.constant 9.99999974E-6 : f32
    %26 = vector.broadcast %cst_11 : f32 to vector<40x1xf32>
    %27 = arith.addf %25, %26 : vector<40x1xf32>
    %28 = math.rsqrt %27 : vector<40x1xf32>
    %29 = vector.broadcast %28 : vector<40x1xf32> to vector<40x21xf32>
    %30 = arith.mulf %20, %29 : vector<40x21xf32>
    %c0_12 = arith.constant 0 : index
    %c0_13 = arith.constant 0 : index
    %c0_14 = arith.constant 0 : index
    %31 = vector.load %arg4[%c0_12, %c0_13, %c0_14] : memref<2x40x21xf32, #tpu.memory_space<vmem>>, vector<1x40x21xf32>
    %32 = vector.shape_cast %31 : vector<1x40x21xf32> to vector<40x21xf32>
    %33 = vector.shape_cast %30 : vector<40x21xf32> to vector<1x40x21xf32>
    tpu.vector_store %arg4[%c0_12, %c0_13, %c0_14], %33 {strides = array<i32>} : memref<2x40x21xf32, #tpu.memory_space<vmem>>, vector<1x40x21xf32>,
    %34 = vector.extract_strided_slice %13 {offsets = [0, 24], sizes = [40, 21], strides = [1, 1]} : vector<128x48xf32> to vector<40x21xf32>
    %cst_15 = arith.constant dense<0.000000e+00> : vector<40xf32>
    %35 = vector.multi_reduction <add>, %34, %cst_15 [1] : vector<40x21xf32> to vector<40xf32>
    %36 = vector.shape_cast %35 : vector<40xf32> to vector<40x1xf32>
    %cst_16 = arith.constant 2.100000e+01 : f32
    %37 = vector.broadcast %cst_16 : f32 to vector<40x1xf32>
    %38 = arith.divf %36, %37 : vector<40x1xf32>
    %39 = vector.broadcast %38 : vector<40x1xf32> to vector<40x21xf32>
    %40 = arith.subf %34, %39 : vector<40x21xf32>
    %41 = arith.mulf %40, %40 : vector<40x21xf32>
    %cst_17 = arith.constant dense<0.000000e+00> : vector<40xf32>
    %42 = vector.multi_reduction <add>, %41, %cst_17 [1] : vector<40x21xf32> to vector<40xf32>
    %43 = vector.shape_cast %42 : vector<40xf32> to vector<40x1xf32>
    %cst_18 = arith.constant 2.100000e+01 : f32
    %44 = vector.broadcast %cst_18 : f32 to vector<40x1xf32>
    %45 = arith.divf %43, %44 : vector<40x1xf32>
    %cst_19 = arith.constant 9.99999974E-6 : f32
    %46 = vector.broadcast %cst_19 : f32 to vector<40x1xf32>
    %47 = arith.addf %45, %46 : vector<40x1xf32>
    %48 = math.rsqrt %47 : vector<40x1xf32>
    %49 = vector.broadcast %48 : vector<40x1xf32> to vector<40x21xf32>
    %50 = arith.mulf %40, %49 : vector<40x21xf32>
    %c1 = arith.constant 1 : index
    %c0_20 = arith.constant 0 : index
    %c0_21 = arith.constant 0 : index
    %51 = vector.load %arg4[%c1, %c0_20, %c0_21] : memref<2x40x21xf32, #tpu.memory_space<vmem>>, vector<1x40x21xf32>
    %52 = vector.shape_cast %51 : vector<1x40x21xf32> to vector<40x21xf32>
    %53 = vector.shape_cast %50 : vector<40x21xf32> to vector<1x40x21xf32>
    tpu.vector_store %arg4[%c1, %c0_20, %c0_21], %53 {strides = array<i32>} : memref<2x40x21xf32, #tpu.memory_space<vmem>>, vector<1x40x21xf32>,
    return
  }
  func.func @transform_0(%arg0: i32) -> (i32, i32) {
    %c0_i32 = arith.constant 0 : i32
    %c0_i32_0 = arith.constant 0 : i32
    return %arg0, %c0_i32 : i32, i32
  }
  func.func @transform_1(%arg0: i32) -> (i32, i32) {
    %c0_i32 = arith.constant 0 : i32
    %c0_i32_0 = arith.constant 0 : i32
    %c0_i32_1 = arith.constant 0 : i32
    return %c0_i32, %c0_i32_0 : i32, i32
  }
  func.func @transform_2(%arg0: i32) -> (i32, i32) {
    %c0_i32 = arith.constant 0 : i32
    %c0_i32_0 = arith.constant 0 : i32
    %c0_i32_1 = arith.constant 0 : i32
    return %c0_i32, %c0_i32_0 : i32, i32
  }
  func.func @transform_3(%arg0: i32) -> (i32, i32, i32) {
    %c0_i32 = arith.constant 0 : i32
    %c0_i32_0 = arith.constant 0 : i32
    %c0_i32_1 = arith.constant 0 : i32
    return %arg0, %c0_i32, %c0_i32_0 : i32, i32, i32
  }
}

</mosaic_0001>

<bundles_post_ra>
// kernel: base_encoder_forward.1
= control target key start
LH: loop header
LB: loop body
LE: loop exit
PB: predicated region body
PF: predicated region fallthrough
CT: control target
= control target key end

     0   :  { %vm1036_vm0 = vcmask 171008   ;;  %s2764_s1 = inlined_call_operand.vmem [shape: f32[512,512], index: 1, kind: input, shape index: {}]   ;;  %s2765_s0 = inlined_call_operand.vmem [shape: f32[48,512], index: 0, kind: input, shape index: {}]   ;;  %s2766_s2 = inlined_call_operand.vmem [shape: f32[256,128], index: 2, kind: input, shape index: {}]   ;;  %s2767_s3 = inlined_call_operand.vmem [shape: f32[2,40,21], index: 3, kind: output, shape index: {}]  }
   0x1   :  { %v226_v0 = vld [vmem:[%s2764_s1 + $0x5e0] sm:$0xff]  ;;  %v1624_v62 = vld [vmem:[%s2765_s0 + $0x10] sm:$0xff]  ;;  %v1629_v63 = vld [vmem:[%s2765_s0 + $0x18] sm:$0xff] }
   0x2   :  { %v222_v1 = vld [vmem:[%s2764_s1 + $0x5c0] sm:$0xff]  ;;  %364 = vmatpush.msra.mxu2 %v226_v0  ;;  %v227_v0 = vld [vmem:[%s2764_s1 + $0x5e8] sm:$0xff] }
   0x3   :  { %v290_v2 = vld [vmem:[%s2764_s1 + $0x7e0] sm:$0xff] }
   0x4   :  { %399 = vmatpush.msra.mxu3 %v290_v2  ;;  %v98_v3 = vld [vmem:[%s2764_s1 + $0x1e0] sm:$0xff]  ;;  %365 = vmatpush.msra.mxu2 %v222_v1  ;;  %v291_v1 = vld [vmem:[%s2764_s1 + $0x7e8] sm:$0xff] }
   0x5   :  { %v162_v4 = vld [vmem:[%s2764_s1 + $0x3e0] sm:$0xff]  ;;  %294 = vmatpush.msra.mxu0 %v98_v3 }
   0x6   :  { %v218_v5 = vld [vmem:[%s2764_s1 + $0x5a0] sm:$0xff]  ;;  %329 = vmatpush.msra.mxu1 %v162_v4  ;;  %v223_v4 = vld [vmem:[%s2764_s1 + $0x5c8] sm:$0xff] }
   0x7   :  { %v286_v6 = vld [vmem:[%s2764_s1 + $0x7c0] sm:$0xff]  ;;  %366 = vmatpush.msra.mxu2 %v218_v5 }
   0x8   :  { %v94_v7 = vld [vmem:[%s2764_s1 + $0x1c0] sm:$0xff]  ;;  %400 = vmatpush.msra.mxu3 %v286_v6  ;;  %v1656_v6 = vld [vmem:[%s2765_s0 + $0x8] sm:$0xff] }
   0x9   :  { %v158_v8 = vld [vmem:[%s2764_s1 + $0x3c0] sm:$0xff]  ;;  %295 = vmatpush.msra.mxu0 %v94_v7  ;;  %v99_v7 = vld [vmem:[%s2764_s1 + $0x1e8] sm:$0xff] }
   0xa   :  { %v282_v9 = vld [vmem:[%s2764_s1 + $0x7a0] sm:$0xff]  ;;  %330 = vmatpush.msra.mxu1 %v158_v8  ;;  %v163_v8 = vld [vmem:[%s2764_s1 + $0x3e8] sm:$0xff] }
   0xb   :  { %v90_v10 = vld [vmem:[%s2764_s1 + $0x1a0] sm:$0xff]  ;;  %401 = vmatpush.msra.mxu3 %v282_v9  ;;  %v287_v9 = vld [vmem:[%s2764_s1 + $0x7c8] sm:$0xff] }
   0xc   :  { %v214_v11 = vld [vmem:[%s2764_s1 + $0x580] sm:$0xff]  ;;  %296 = vmatpush.msra.mxu0 %v90_v10  ;;  %v219_v10 = vld [vmem:[%s2764_s1 + $0x5a8] sm:$0xff] }
   0xd   :  { %v154_v12 = vld [vmem:[%s2764_s1 + $0x3a0] sm:$0xff]  ;;  %367 = vmatpush.msra.mxu2 %v214_v11  ;;  %v95_v11 = vld [vmem:[%s2764_s1 + $0x1c8] sm:$0xff] }
   0xe   :  { %v278_v13 = vld [vmem:[%s2764_s1 + $0x780] sm:$0xff]  ;;  %331 = vmatpush.msra.mxu1 %v154_v12  ;;  %v159_v12 = vld [vmem:[%s2764_s1 + $0x3c8] sm:$0xff] }
   0xf   :  { %v86_v14 = vld [vmem:[%s2764_s1 + $0x180] sm:$0xff]  ;;  %402 = vmatpush.msra.mxu3 %v278_v13  ;;  %v283_v13 = vld [vmem:[%s2764_s1 + $0x7a8] sm:$0xff] }
  0x10   :  { %v150_v15 = vld [vmem:[%s2764_s1 + $0x380] sm:$0xff]  ;;  %297 = vmatpush.msra.mxu0 %v86_v14  ;;  %v1684_v14 = vld [vmem:[%s2765_s0 + $0x30] sm:$0xff] }
  0x11   :  { %v210_v16 = vld [vmem:[%s2764_s1 + $0x560] sm:$0xff]  ;;  %332 = vmatpush.msra.mxu1 %v150_v15  ;;  %v1689_v15 = vld [vmem:[%s2765_s0 + $0x38] sm:$0xff] }
  0x12   :  { %v274_v17 = vld [vmem:[%s2764_s1 + $0x760] sm:$0xff]  ;;  %368 = vmatpush.msra.mxu2 %v210_v16  ;;  %v215_v16 = vld [vmem:[%s2764_s1 + $0x588] sm:$0xff] }
  0x13   :  { %v82_v18 = vld [vmem:[%s2764_s1 + $0x160] sm:$0xff]  ;;  %403 = vmatpush.msra.mxu3 %v274_v17  ;;  %v91_v17 = vld [vmem:[%s2764_s1 + $0x1a8] sm:$0xff] }
  0x14   :  { %v146_v19 = vld [vmem:[%s2764_s1 + $0x360] sm:$0xff]  ;;  %298 = vmatpush.msra.mxu0 %v82_v18  ;;  %v155_v18 = vld [vmem:[%s2764_s1 + $0x3a8] sm:$0xff] }
  0x15   :  { %v206_v20 = vld [vmem:[%s2764_s1 + $0x540] sm:$0xff]  ;;  %333 = vmatpush.msra.mxu1 %v146_v19  ;;  %v279_v19 = vld [vmem:[%s2764_s1 + $0x788] sm:$0xff] }
  0x16   :  { %v270_v21 = vld [vmem:[%s2764_s1 + $0x740] sm:$0xff]  ;;  %369 = vmatpush.msra.mxu2 %v206_v20 }
  0x17   :  { %v78_v22 = vld [vmem:[%s2764_s1 + $0x140] sm:$0xff]  ;;  %404 = vmatpush.msra.mxu3 %v270_v21  ;;  %v211_v21 = vld [vmem:[%s2764_s1 + $0x568] sm:$0xff] }
  0x18   :  { %v142_v23 = vld [vmem:[%s2764_s1 + $0x340] sm:$0xff]  ;;  %299 = vmatpush.msra.mxu0 %v78_v22  ;;  %v1716_v22 = vld [vmem:[%s2765_s0 + $0x28] sm:$0xff] }
  0x19   :  { %v202_v24 = vld [vmem:[%s2764_s1 + $0x520] sm:$0xff]  ;;  %334 = vmatpush.msra.mxu1 %v142_v23  ;;  %v87_v23 = vld [vmem:[%s2764_s1 + $0x188] sm:$0xff] }
  0x1a   :  { %v266_v25 = vld [vmem:[%s2764_s1 + $0x720] sm:$0xff]  ;;  %370 = vmatpush.msra.mxu2 %v202_v24  ;;  %v151_v24 = vld [vmem:[%s2764_s1 + $0x388] sm:$0xff] }
  0x1b   :  { %v74_v26 = vld [vmem:[%s2764_s1 + $0x120] sm:$0xff]  ;;  %405 = vmatpush.msra.mxu3 %v266_v25  ;;  %v275_v25 = vld [vmem:[%s2764_s1 + $0x768] sm:$0xff] }
  0x1c   :  { %v138_v27 = vld [vmem:[%s2764_s1 + $0x320] sm:$0xff]  ;;  %300 = vmatpush.msra.mxu0 %v74_v26  ;;  %v207_v26 = vld [vmem:[%s2764_s1 + $0x548] sm:$0xff] }
  0x1d   :  { %v198_v28 = vld [vmem:[%s2764_s1 + $0x500] sm:$0xff]  ;;  %335 = vmatpush.msra.mxu1 %v138_v27  ;;  %v83_v27 = vld [vmem:[%s2764_s1 + $0x168] sm:$0xff] }
  0x1e   :  { %v262_v29 = vld [vmem:[%s2764_s1 + $0x700] sm:$0xff]  ;;  %371 = vmatpush.msra.mxu2 %v198_v28  ;;  %v147_v28 = vld [vmem:[%s2764_s1 + $0x368] sm:$0xff] }
  0x1f   :  { %v70_v30 = vld [vmem:[%s2764_s1 + $0x100] sm:$0xff]  ;;  %406 = vmatpush.msra.mxu3 %v262_v29  ;;  %v271_v29 = vld [vmem:[%s2764_s1 + $0x748] sm:$0xff] }
  0x20   :  { %v134_v31 = vld [vmem:[%s2764_s1 + $0x300] sm:$0xff]  ;;  %301 = vmatpush.msra.mxu0 %v70_v30  ;;  %v1744_v30 = vld [vmem:[%s2765_s0 + $0x50] sm:$0xff] }
  0x21   :  { %v194_v32 = vld [vmem:[%s2764_s1 + $0x4e0] sm:$0xff]  ;;  %336 = vmatpush.msra.mxu1 %v134_v31  ;;  %v1749_v31 = vld [vmem:[%s2765_s0 + $0x58] sm:$0xff] }
  0x22   :  { %v258_v33 = vld [vmem:[%s2764_s1 + $0x6e0] sm:$0xff]  ;;  %372 = vmatpush.msra.mxu2 %v194_v32  ;;  %v203_v32 = vld [vmem:[%s2764_s1 + $0x528] sm:$0xff] }
  0x23   :  { %v66_v34 = vld [vmem:[%s2764_s1 + $0xe0] sm:$0xff]  ;;  %407 = vmatpush.msra.mxu3 %v258_v33  ;;  %v79_v33 = vld [vmem:[%s2764_s1 + $0x148] sm:$0xff] }
  0x24   :  { %v130_v35 = vld [vmem:[%s2764_s1 + $0x2e0] sm:$0xff]  ;;  %302 = vmatpush.msra.mxu0 %v66_v34  ;;  %v143_v34 = vld [vmem:[%s2764_s1 + $0x348] sm:$0xff] }
  0x25   :  { %v190_v36 = vld [vmem:[%s2764_s1 + $0x4c0] sm:$0xff]  ;;  %337 = vmatpush.msra.mxu1 %v130_v35  ;;  %v267_v35 = vld [vmem:[%s2764_s1 + $0x728] sm:$0xff] }
  0x26   :  { %v254_v37 = vld [vmem:[%s2764_s1 + $0x6c0] sm:$0xff]  ;;  %373 = vmatpush.msra.mxu2 %v190_v36 }
  0x27   :  { %v62_v38 = vld [vmem:[%s2764_s1 + $0xc0] sm:$0xff]  ;;  %408 = vmatpush.msra.mxu3 %v254_v37  ;;  %v199_v37 = vld [vmem:[%s2764_s1 + $0x508] sm:$0xff] }
  0x28   :  { %v126_v39 = vld [vmem:[%s2764_s1 + $0x2c0] sm:$0xff]  ;;  %303 = vmatpush.msra.mxu0 %v62_v38  ;;  %v1776_v38 = vld [vmem:[%s2765_s0 + $0x48] sm:$0xff] }
  0x29   :  { %v186_v40 = vld [vmem:[%s2764_s1 + $0x4a0] sm:$0xff]  ;;  %338 = vmatpush.msra.mxu1 %v126_v39  ;;  %v75_v39 = vld [vmem:[%s2764_s1 + $0x128] sm:$0xff] }
  0x2a   :  { %v250_v41 = vld [vmem:[%s2764_s1 + $0x6a0] sm:$0xff]  ;;  %374 = vmatpush.msra.mxu2 %v186_v40  ;;  %v139_v40 = vld [vmem:[%s2764_s1 + $0x328] sm:$0xff] }
  0x2b   :  { %v58_v42 = vld [vmem:[%s2764_s1 + $0xa0] sm:$0xff]  ;;  %409 = vmatpush.msra.mxu3 %v250_v41  ;;  %v263_v41 = vld [vmem:[%s2764_s1 + $0x708] sm:$0xff] }
  0x2c   :  { %v122_v43 = vld [vmem:[%s2764_s1 + $0x2a0] sm:$0xff]  ;;  %304 = vmatpush.msra.mxu0 %v58_v42  ;;  %v195_v42 = vld [vmem:[%s2764_s1 + $0x4e8] sm:$0xff] }
  0x2d   :  { %v182_v44 = vld [vmem:[%s2764_s1 + $0x480] sm:$0xff]  ;;  %339 = vmatpush.msra.mxu1 %v122_v43  ;;  %v71_v43 = vld [vmem:[%s2764_s1 + $0x108] sm:$0xff] }
  0x2e   :  { %v246_v45 = vld [vmem:[%s2764_s1 + $0x680] sm:$0xff]  ;;  %375 = vmatpush.msra.mxu2 %v182_v44  ;;  %v135_v44 = vld [vmem:[%s2764_s1 + $0x308] sm:$0xff] }
  0x2f   :  { %v54_v46 = vld [vmem:[%s2764_s1 + $0x80] sm:$0xff]  ;;  %410 = vmatpush.msra.mxu3 %v246_v45  ;;  %v259_v45 = vld [vmem:[%s2764_s1 + $0x6e8] sm:$0xff] }
  0x30   :  { %v118_v47 = vld [vmem:[%s2764_s1 + $0x280] sm:$0xff]  ;;  %305 = vmatpush.msra.mxu0 %v54_v46  ;;  %v1804_v46 = vld [vmem:[%s2765_s0 + $0x70] sm:$0xff] }
  0x31   :  { %v178_v48 = vld [vmem:[%s2764_s1 + $0x460] sm:$0xff]  ;;  %340 = vmatpush.msra.mxu1 %v118_v47  ;;  %v1809_v47 = vld [vmem:[%s2765_s0 + $0x78] sm:$0xff] }
  0x32   :  { %v242_v49 = vld [vmem:[%s2764_s1 + $0x660] sm:$0xff]  ;;  %376 = vmatpush.msra.mxu2 %v178_v48  ;;  %v191_v48 = vld [vmem:[%s2764_s1 + $0x4c8] sm:$0xff] }
  0x33   :  { %v50_v50 = vld [vmem:[%s2764_s1 + $0x60] sm:$0xff]  ;;  %411 = vmatpush.msra.mxu3 %v242_v49  ;;  %v67_v49 = vld [vmem:[%s2764_s1 + $0xe8] sm:$0xff] }
  0x34   :  { %v114_v51 = vld [vmem:[%s2764_s1 + $0x260] sm:$0xff]  ;;  %306 = vmatpush.msra.mxu0 %v50_v50  ;;  %v131_v50 = vld [vmem:[%s2764_s1 + $0x2e8] sm:$0xff] }
  0x35   :  { %v174_v52 = vld [vmem:[%s2764_s1 + $0x440] sm:$0xff]  ;;  %341 = vmatpush.msra.mxu1 %v114_v51  ;;  %v255_v51 = vld [vmem:[%s2764_s1 + $0x6c8] sm:$0xff] }
  0x36   :  { %v238_v53 = vld [vmem:[%s2764_s1 + $0x640] sm:$0xff]  ;;  %377 = vmatpush.msra.mxu2 %v174_v52 }
  0x37   :  { %v46_v54 = vld [vmem:[%s2764_s1 + $0x40] sm:$0xff]  ;;  %412 = vmatpush.msra.mxu3 %v238_v53  ;;  %v187_v53 = vld [vmem:[%s2764_s1 + $0x4a8] sm:$0xff] }
  0x38   :  { %v110_v55 = vld [vmem:[%s2764_s1 + $0x240] sm:$0xff]  ;;  %307 = vmatpush.msra.mxu0 %v46_v54  ;;  %v1836_v54 = vld [vmem:[%s2765_s0 + $0x68] sm:$0xff] }
  0x39   :  { %v170_v56 = vld [vmem:[%s2764_s1 + $0x420] sm:$0xff]  ;;  %342 = vmatpush.msra.mxu1 %v110_v55  ;;  %v63_v55 = vld [vmem:[%s2764_s1 + $0xc8] sm:$0xff] }
  0x3a   :  { %v234_v57 = vld [vmem:[%s2764_s1 + $0x620] sm:$0xff]  ;;  %378 = vmatpush.msra.mxu2 %v170_v56  ;;  %v127_v56 = vld [vmem:[%s2764_s1 + $0x2c8] sm:$0xff] }
  0x3b   :  { %v42_v58 = vld [vmem:[%s2764_s1 + $0x20] sm:$0xff]  ;;  %413 = vmatpush.msra.mxu3 %v234_v57  ;;  %v251_v57 = vld [vmem:[%s2764_s1 + $0x6a8] sm:$0xff] }
  0x3c   :  { %v106_v59 = vld [vmem:[%s2764_s1 + $0x220] sm:$0xff]  ;;  %308 = vmatpush.msra.mxu0 %v42_v58  ;;  %v183_v58 = vld [vmem:[%s2764_s1 + $0x488] sm:$0xff] }
  0x3d   :  { %v166_v60 = vld [vmem:[%s2764_s1 + $0x400] sm:$0xff]  ;;  %343 = vmatpush.msra.mxu1 %v106_v59  ;;  %v59_v59 = vld [vmem:[%s2764_s1 + $0xa8] sm:$0xff] }
  0x3e   :  { %v230_v61 = vld [vmem:[%s2764_s1 + $0x600] sm:$0xff]  ;;  %379 = vmatpush.msra.mxu2 %v166_v60  ;;  %v123_v60 = vld [vmem:[%s2764_s1 + $0x2a8] sm:$0xff] }
  0x3f   :  { %414 = vmatpush.msra.mxu3 %v230_v61  ;;  %v38_v2 = vld [vmem:[%s2764_s1] sm:$0xff]  ;;  %380 = vmatmul.f32.vlgmr.msra.gmra.mxu2 %v1624_v62  ;;  %v247_v61 = vld [vmem:[%s2764_s1 + $0x688] sm:$0xff] }
  0x40   :  { %v102_v3 = vld [vmem:[%s2764_s1 + $0x200] sm:$0xff]  ;;  %415 = vmatmul.f32.vlgmr.msra.gmra.mxu3 %v1629_v63  ;;  %504 = vmatpush.msrb.mxu2 %v227_v0  ;;  %v1864_v0 = vld [vmem:[%s2765_s0 + $0x90] sm:$0xff] }
  0x41   :  { %v1651_v5 = vld [vmem:[%s2765_s0] sm:$0xff]  ;;  %539 = vmatpush.msrb.mxu3 %v291_v1  ;;  %309 = vmatpush.msra.mxu0 %v38_v2  ;;  %v1869_v1 = vld [vmem:[%s2765_s0 + $0x98] sm:$0xff]  ;;  %v179_v2 = vld [vmem:[%s2764_s1 + $0x468] sm:$0xff] }
  0x42   :  { %344 = vmatpush.msra.mxu1 %v102_v3  ;;  %505 = vmatpush.msrb.mxu2 %v223_v4  ;;  %v1708_v20 = vld [vmem:[%s2765_s0 + $0x20] sm:$0xff]  ;;  %v55_v3 = vld [vmem:[%s2764_s1 + $0x88] sm:$0xff] }
  0x43   :  { %310 = vmatmul.f32.vlgmr.msra.gmra.mxu0 %v1651_v5  ;;  %345 = vmatmul.f32.vlgmr.msra.gmra.mxu1 %v1656_v6  ;;  %v1768_v36 = vld [vmem:[%s2765_s0 + $0x40] sm:$0xff]  ;;  %v119_v4 = vld [vmem:[%s2764_s1 + $0x288] sm:$0xff] }
  0x44   :  { %434 = vmatpush.msrb.mxu0 %v99_v7  ;;  %469 = vmatpush.msrb.mxu1 %v163_v8  ;;  %v1828_v52 = vld [vmem:[%s2765_s0 + $0x60] sm:$0xff]  ;;  %v243_v7 = vld [vmem:[%s2764_s1 + $0x668] sm:$0xff] }
  0x45   :  { %540 = vmatpush.msrb.mxu3 %v287_v9  ;;  %506 = vmatpush.msrb.mxu2 %v219_v10  ;;  %v1888_v8 = vld [vmem:[%s2765_s0 + $0x80] sm:$0xff]  ;;  %v175_v9 = vld [vmem:[%s2764_s1 + $0x448] sm:$0xff] }
  0x46   :  { %435 = vmatpush.msrb.mxu0 %v95_v11  ;;  %470 = vmatpush.msrb.mxu1 %v159_v12  ;;  %v1896_v10 = vld [vmem:[%s2765_s0 + $0x88] sm:$0xff] }
  0x47   :  { %541 = vmatpush.msrb.mxu3 %v283_v13  ;;  %383 = vmatmul.f32.gmra.mxu2 %v1684_v14  ;;  %v51_v11 = vld [vmem:[%s2764_s1 + $0x68] sm:$0xff] }
  0x48   :  { %418 = vmatmul.f32.gmra.mxu3 %v1689_v15  ;;  %507 = vmatpush.msrb.mxu2 %v215_v16  ;;  %v115_v12 = vld [vmem:[%s2764_s1 + $0x268] sm:$0xff] }
  0x49   :  { %436 = vmatpush.msrb.mxu0 %v91_v17  ;;  %471 = vmatpush.msrb.mxu1 %v155_v18  ;;  %v239_v13 = vld [vmem:[%s2764_s1 + $0x648] sm:$0xff] }
  0x4a   :  { %542 = vmatpush.msrb.mxu3 %v279_v19  ;;  %508 = vmatpush.msrb.mxu2 %v211_v21  ;;  %v171_v16 = vld [vmem:[%s2764_s1 + $0x428] sm:$0xff]  ;;  %v1924_v21 = vld [vmem:[%s2765_s0 + $0xb0] sm:$0xff] }
  0x4b   :  { %313 = vmatmul.f32.gmra.mxu0 %v1708_v20  ;;  %348 = vmatmul.f32.gmra.mxu1 %v1716_v22  ;;  %v47_v17 = vld [vmem:[%s2764_s1 + $0x48] sm:$0xff] }
  0x4c   :  { %437 = vmatpush.msrb.mxu0 %v87_v23  ;;  %472 = vmatpush.msrb.mxu1 %v151_v24  ;;  %v111_v18 = vld [vmem:[%s2764_s1 + $0x248] sm:$0xff]  ;;  %v1929_v23 = vld [vmem:[%s2765_s0 + $0xb8] sm:$0xff] }
  0x4d   :  { %543 = vmatpush.msrb.mxu3 %v275_v25  ;;  %509 = vmatpush.msrb.mxu2 %v207_v26  ;;  %v235_v19 = vld [vmem:[%s2764_s1 + $0x628] sm:$0xff] }
  0x4e   :  { %438 = vmatpush.msrb.mxu0 %v83_v27  ;;  %473 = vmatpush.msrb.mxu1 %v147_v28  ;;  %v167_v24 = vld [vmem:[%s2764_s1 + $0x408] sm:$0xff]  ;;  %v1948_v28 = vld [vmem:[%s2765_s0 + $0xa0] sm:$0xff] }
  0x4f   :  { %544 = vmatpush.msrb.mxu3 %v271_v29  ;;  %386 = vmatmul.f32.gmra.mxu2 %v1744_v30  ;;  %v43_v25 = vld [vmem:[%s2764_s1 + $0x28] sm:$0xff]  ;;  %v228_v29 = vld [vmem:[%s2764_s1 + $0x5f0] sm:$0xff] }
  0x50   :  { %421 = vmatmul.f32.gmra.mxu3 %v1749_v31  ;;  %510 = vmatpush.msrb.mxu2 %v203_v32  ;;  %v107_v26 = vld [vmem:[%s2764_s1 + $0x228] sm:$0xff] }
  0x51   :  { %439 = vmatpush.msrb.mxu0 %v79_v33  ;;  %474 = vmatpush.msrb.mxu1 %v143_v34  ;;  %v231_v27 = vld [vmem:[%s2764_s1 + $0x608] sm:$0xff] }
  0x52   :  { %545 = vmatpush.msrb.mxu3 %v267_v35  ;;  %511 = vmatpush.msrb.mxu2 %v199_v37  ;;  %v1956_v32 = vld [vmem:[%s2765_s0 + $0xa8] sm:$0xff]  ;;  %v292_v35 = vld [vmem:[%s2764_s1 + $0x7f0] sm:$0xff] }
  0x53   :  { %316 = vmatmul.f32.gmra.mxu0 %v1768_v36  ;;  %351 = vmatmul.f32.gmra.mxu1 %v1776_v38  ;;  %v39_v33 = vld [vmem:[%s2764_s1 + $0x8] sm:$0xff]  ;;  %v224_v37 = vld [vmem:[%s2764_s1 + $0x5d0] sm:$0xff] }
  0x54   :  { %440 = vmatpush.msrb.mxu0 %v75_v39  ;;  %475 = vmatpush.msrb.mxu1 %v139_v40  ;;  %v103_v34 = vld [vmem:[%s2764_s1 + $0x208] sm:$0xff]  ;;  %v100_v39 = vld [vmem:[%s2764_s1 + $0x1f0] sm:$0xff] }
  0x55   :  { %546 = vmatpush.msrb.mxu3 %v263_v41  ;;  %512 = vmatpush.msrb.mxu2 %v195_v42  ;;  %v164_v40 = vld [vmem:[%s2764_s1 + $0x3f0] sm:$0xff] }
  0x56   :  { %441 = vmatpush.msrb.mxu0 %v71_v43  ;;  %476 = vmatpush.msrb.mxu1 %v135_v44  ;;  %v288_v41 = vld [vmem:[%s2764_s1 + $0x7d0] sm:$0xff] }
  0x57   :  { %547 = vmatpush.msrb.mxu3 %v259_v45  ;;  %389 = vmatmul.f32.gmra.mxu2 %v1804_v46  ;;  %v220_v42 = vld [vmem:[%s2764_s1 + $0x5b0] sm:$0xff] }
  0x58   :  { %424 = vmatmul.f32.gmra.mxu3 %v1809_v47  ;;  %513 = vmatpush.msrb.mxu2 %v191_v48  ;;  %v96_v43 = vld [vmem:[%s2764_s1 + $0x1d0] sm:$0xff] }
  0x59   :  { %442 = vmatpush.msrb.mxu0 %v67_v49  ;;  %477 = vmatpush.msrb.mxu1 %v131_v50  ;;  %v160_v44 = vld [vmem:[%s2764_s1 + $0x3d0] sm:$0xff] }
  0x5a   :  { %548 = vmatpush.msrb.mxu3 %v255_v51  ;;  %514 = vmatpush.msrb.mxu2 %v187_v53  ;;  %v284_v45 = vld [vmem:[%s2764_s1 + $0x7b0] sm:$0xff] }
  0x5b   :  { %319 = vmatmul.f32.gmra.mxu0 %v1828_v52  ;;  %354 = vmatmul.f32.gmra.mxu1 %v1836_v54  ;;  %v216_v48 = vld [vmem:[%s2764_s1 + $0x590] sm:$0xff] }
  0x5c   :  { %443 = vmatpush.msrb.mxu0 %v63_v55  ;;  %478 = vmatpush.msrb.mxu1 %v127_v56  ;;  %v92_v49 = vld [vmem:[%s2764_s1 + $0x1b0] sm:$0xff] }
  0x5d   :  { %549 = vmatpush.msrb.mxu3 %v251_v57  ;;  %515 = vmatpush.msrb.mxu2 %v183_v58  ;;  %v156_v50 = vld [vmem:[%s2764_s1 + $0x3b0] sm:$0xff] }
  0x5e   :  { %444 = vmatpush.msrb.mxu0 %v59_v59  ;;  %479 = vmatpush.msrb.mxu1 %v123_v60  ;;  %v280_v51 = vld [vmem:[%s2764_s1 + $0x790] sm:$0xff] }
  0x5f   :  { %550 = vmatpush.msrb.mxu3 %v247_v61  ;;  %392 = vmatmul.f32.gmra.mxu2 %v1864_v0  ;;  %v212_v53 = vld [vmem:[%s2764_s1 + $0x570] sm:$0xff] }
  0x60   :  { %427 = vmatmul.f32.gmra.mxu3 %v1869_v1  ;;  %516 = vmatpush.msrb.mxu2 %v179_v2  ;;  %v88_v55 = vld [vmem:[%s2764_s1 + $0x190] sm:$0xff] }
  0x61   :  { %445 = vmatpush.msrb.mxu0 %v55_v3  ;;  %480 = vmatpush.msrb.mxu1 %v119_v4  ;;  %v152_v56 = vld [vmem:[%s2764_s1 + $0x390] sm:$0xff] }
  0x62   :  { %551 = vmatpush.msrb.mxu3 %v243_v7  ;;  %517 = vmatpush.msrb.mxu2 %v175_v9  ;;  %v276_v57 = vld [vmem:[%s2764_s1 + $0x770] sm:$0xff] }
  0x63   :  { %322 = vmatmul.f32.gmra.mxu0 %v1888_v8  ;;  %357 = vmatmul.f32.gmra.mxu1 %v1896_v10  ;;  %v208_v58 = vld [vmem:[%s2764_s1 + $0x550] sm:$0xff] }
  0x64   :  { %446 = vmatpush.msrb.mxu0 %v51_v11  ;;  %481 = vmatpush.msrb.mxu1 %v115_v12  ;;  %v84_v59 = vld [vmem:[%s2764_s1 + $0x170] sm:$0xff] }
  0x65   :  { %552 = vmatpush.msrb.mxu3 %v239_v13  ;;  %518 = vmatpush.msrb.mxu2 %v171_v16  ;;  %v148_v60 = vld [vmem:[%s2764_s1 + $0x370] sm:$0xff] }
  0x66   :  { %447 = vmatpush.msrb.mxu0 %v47_v17  ;;  %482 = vmatpush.msrb.mxu1 %v111_v18  ;;  %v272_v61 = vld [vmem:[%s2764_s1 + $0x750] sm:$0xff] }
  0x67   :  { %553 = vmatpush.msrb.mxu3 %v235_v19  ;;  %395 = vmatmul.f32.gmra.mxu2 %v1924_v21  ;;  %v204_v2 = vld [vmem:[%s2764_s1 + $0x530] sm:$0xff] }
  0x68   :  { %430 = vmatmul.f32.gmra.mxu3 %v1929_v23  ;;  %519 = vmatpush.msrb.mxu2 %v167_v24  ;;  %v80_v3 = vld [vmem:[%s2764_s1 + $0x150] sm:$0xff] }
  0x69   :  { %448 = vmatpush.msrb.mxu0 %v43_v25  ;;  %483 = vmatpush.msrb.mxu1 %v107_v26  ;;  %v144_v4 = vld [vmem:[%s2764_s1 + $0x350] sm:$0xff] }
  0x6a   :  { %554 = vmatpush.msrb.mxu3 %v231_v27  ;;  %644 = vmatpush.msra.mxu2 %v228_v29  ;;  %v268_v7 = vld [vmem:[%s2764_s1 + $0x730] sm:$0xff] }
  0x6b   :  { %325 = vmatmul.f32.gmra.mxu0 %v1948_v28  ;;  %360 = vmatmul.f32.gmra.mxu1 %v1956_v32  ;;  %v200_v9 = vld [vmem:[%s2764_s1 + $0x510] sm:$0xff] }
  0x6c   :  { %449 = vmatpush.msrb.mxu0 %v39_v33  ;;  %484 = vmatpush.msrb.mxu1 %v103_v34  ;;  %v76_v11 = vld [vmem:[%s2764_s1 + $0x130] sm:$0xff] }
  0x6d   :  { %679 = vmatpush.msra.mxu3 %v292_v35  ;;  %645 = vmatpush.msra.mxu2 %v224_v37  ;;  %v140_v12 = vld [vmem:[%s2764_s1 + $0x330] sm:$0xff] }
  0x6e   :  { %574 = vmatpush.msra.mxu0 %v100_v39  ;;  %609 = vmatpush.msra.mxu1 %v164_v40  ;;  %v264_v13 = vld [vmem:[%s2764_s1 + $0x710] sm:$0xff] }
  0x6f   :  { %680 = vmatpush.msra.mxu3 %v288_v41  ;;  %520 = vmatmul.f32.vlgmr.msrb.gmra.mxu2 %v1624_v62  ;;  %v196_v16 = vld [vmem:[%s2764_s1 + $0x4f0] sm:$0xff] }
  0x70   :  { %555 = vmatmul.f32.vlgmr.msrb.gmra.mxu3 %v1629_v63  ;;  %646 = vmatpush.msra.mxu2 %v220_v42  ;;  %v72_v17 = vld [vmem:[%s2764_s1 + $0x110] sm:$0xff] }
  0x71   :  { %575 = vmatpush.msra.mxu0 %v96_v43  ;;  %610 = vmatpush.msra.mxu1 %v160_v44  ;;  %v136_v18 = vld [vmem:[%s2764_s1 + $0x310] sm:$0xff] }
  0x72   :  { %681 = vmatpush.msra.mxu3 %v284_v45  ;;  %647 = vmatpush.msra.mxu2 %v216_v48  ;;  %v260_v19 = vld [vmem:[%s2764_s1 + $0x6f0] sm:$0xff] }
  0x73   :  { %450 = vmatmul.f32.vlgmr.msrb.gmra.mxu0 %v1651_v5  ;;  %485 = vmatmul.f32.vlgmr.msrb.gmra.mxu1 %v1656_v6  ;;  %v192_v24 = vld [vmem:[%s2764_s1 + $0x4d0] sm:$0xff] }
  0x74   :  { %576 = vmatpush.msra.mxu0 %v92_v49  ;;  %611 = vmatpush.msra.mxu1 %v156_v50  ;;  %v68_v25 = vld [vmem:[%s2764_s1 + $0xf0] sm:$0xff] }
  0x75   :  { %682 = vmatpush.msra.mxu3 %v280_v51  ;;  %648 = vmatpush.msra.mxu2 %v212_v53  ;;  %v132_v26 = vld [vmem:[%s2764_s1 + $0x2f0] sm:$0xff] }
  0x76   :  { %577 = vmatpush.msra.mxu0 %v88_v55  ;;  %612 = vmatpush.msra.mxu1 %v152_v56  ;;  %v256_v27 = vld [vmem:[%s2764_s1 + $0x6d0] sm:$0xff] }
  0x77   :  { %683 = vmatpush.msra.mxu3 %v276_v57  ;;  %523 = vmatmul.f32.gmra.mxu2 %v1684_v14  ;;  %v188_v29 = vld [vmem:[%s2764_s1 + $0x4b0] sm:$0xff] }
  0x78   :  { %558 = vmatmul.f32.gmra.mxu3 %v1689_v15  ;;  %649 = vmatpush.msra.mxu2 %v208_v58  ;;  %v64_v33 = vld [vmem:[%s2764_s1 + $0xd0] sm:$0xff] }
  0x79   :  { %578 = vmatpush.msra.mxu0 %v84_v59  ;;  %613 = vmatpush.msra.mxu1 %v148_v60  ;;  %v128_v34 = vld [vmem:[%s2764_s1 + $0x2d0] sm:$0xff] }
  0x7a   :  { %684 = vmatpush.msra.mxu3 %v272_v61  ;;  %650 = vmatpush.msra.mxu2 %v204_v2  ;;  %v252_v35 = vld [vmem:[%s2764_s1 + $0x6b0] sm:$0xff]  ;;  %v229_v2 = vld [vmem:[%s2764_s1 + $0x5f8] sm:$0xff] }
  0x7b   :  { %453 = vmatmul.f32.gmra.mxu0 %v1708_v20  ;;  %488 = vmatmul.f32.gmra.mxu1 %v1716_v22  ;;  %v184_v37 = vld [vmem:[%s2764_s1 + $0x490] sm:$0xff] }
  0x7c   :  { %579 = vmatpush.msra.mxu0 %v80_v3  ;;  %614 = vmatpush.msra.mxu1 %v144_v4  ;;  %v60_v39 = vld [vmem:[%s2764_s1 + $0xb0] sm:$0xff] }
  0x7d   :  { %685 = vmatpush.msra.mxu3 %v268_v7  ;;  %651 = vmatpush.msra.mxu2 %v200_v9  ;;  %v124_v40 = vld [vmem:[%s2764_s1 + $0x2b0] sm:$0xff]  ;;  %v293_v7 = vld [vmem:[%s2764_s1 + $0x7f8] sm:$0xff] }
  0x7e   :  { %580 = vmatpush.msra.mxu0 %v76_v11  ;;  %615 = vmatpush.msra.mxu1 %v140_v12  ;;  %v248_v41 = vld [vmem:[%s2764_s1 + $0x690] sm:$0xff]  ;;  %v225_v9 = vld [vmem:[%s2764_s1 + $0x5d8] sm:$0xff] }
  0x7f   :  { %686 = vmatpush.msra.mxu3 %v264_v13  ;;  %526 = vmatmul.f32.gmra.mxu2 %v1744_v30  ;;  %v180_v42 = vld [vmem:[%s2764_s1 + $0x470] sm:$0xff]  ;;  %v101_v11 = vld [vmem:[%s2764_s1 + $0x1f8] sm:$0xff] }
  0x80   :  { %561 = vmatmul.f32.gmra.mxu3 %v1749_v31  ;;  %652 = vmatpush.msra.mxu2 %v196_v16  ;;  %v56_v43 = vld [vmem:[%s2764_s1 + $0x90] sm:$0xff]  ;;  %v165_v12 = vld [vmem:[%s2764_s1 + $0x3f8] sm:$0xff] }
  0x81   :  { %581 = vmatpush.msra.mxu0 %v72_v17  ;;  %616 = vmatpush.msra.mxu1 %v136_v18  ;;  %v120_v44 = vld [vmem:[%s2764_s1 + $0x290] sm:$0xff]  ;;  %v289_v13 = vld [vmem:[%s2764_s1 + $0x7d8] sm:$0xff] }
  0x82   :  { %687 = vmatpush.msra.mxu3 %v260_v19  ;;  %653 = vmatpush.msra.mxu2 %v192_v24  ;;  %v244_v45 = vld [vmem:[%s2764_s1 + $0x670] sm:$0xff]  ;;  %v221_v16 = vld [vmem:[%s2764_s1 + $0x5b8] sm:$0xff] }
  0x83   :  { %456 = vmatmul.f32.gmra.mxu0 %v1768_v36  ;;  %491 = vmatmul.f32.gmra.mxu1 %v1776_v38  ;;  %v176_v48 = vld [vmem:[%s2764_s1 + $0x450] sm:$0xff]  ;;  %v97_v17 = vld [vmem:[%s2764_s1 + $0x1d8] sm:$0xff] }
  0x84   :  { %582 = vmatpush.msra.mxu0 %v68_v25  ;;  %617 = vmatpush.msra.mxu1 %v132_v26  ;;  %v52_v49 = vld [vmem:[%s2764_s1 + $0x70] sm:$0xff]  ;;  %v161_v18 = vld [vmem:[%s2764_s1 + $0x3d8] sm:$0xff] }
  0x85   :  { %688 = vmatpush.msra.mxu3 %v256_v27  ;;  %654 = vmatpush.msra.mxu2 %v188_v29  ;;  %v116_v50 = vld [vmem:[%s2764_s1 + $0x270] sm:$0xff]  ;;  %v285_v19 = vld [vmem:[%s2764_s1 + $0x7b8] sm:$0xff] }
  0x86   :  { %583 = vmatpush.msra.mxu0 %v64_v33  ;;  %618 = vmatpush.msra.mxu1 %v128_v34  ;;  %v240_v51 = vld [vmem:[%s2764_s1 + $0x650] sm:$0xff]  ;;  %v217_v24 = vld [vmem:[%s2764_s1 + $0x598] sm:$0xff] }
  0x87   :  { %689 = vmatpush.msra.mxu3 %v252_v35  ;;  %529 = vmatmul.f32.gmra.mxu2 %v1804_v46  ;;  %v172_v53 = vld [vmem:[%s2764_s1 + $0x430] sm:$0xff]  ;;  %v93_v25 = vld [vmem:[%s2764_s1 + $0x1b8] sm:$0xff] }
  0x88   :  { %564 = vmatmul.f32.gmra.mxu3 %v1809_v47  ;;  %655 = vmatpush.msra.mxu2 %v184_v37  ;;  %v48_v55 = vld [vmem:[%s2764_s1 + $0x50] sm:$0xff]  ;;  %v157_v26 = vld [vmem:[%s2764_s1 + $0x3b8] sm:$0xff] }
  0x89   :  { %584 = vmatpush.msra.mxu0 %v60_v39  ;;  %619 = vmatpush.msra.mxu1 %v124_v40  ;;  %v112_v56 = vld [vmem:[%s2764_s1 + $0x250] sm:$0xff]  ;;  %v281_v27 = vld [vmem:[%s2764_s1 + $0x798] sm:$0xff] }
  0x8a   :  { %690 = vmatpush.msra.mxu3 %v248_v41  ;;  %656 = vmatpush.msra.mxu2 %v180_v42  ;;  %v236_v57 = vld [vmem:[%s2764_s1 + $0x630] sm:$0xff]  ;;  %v213_v29 = vld [vmem:[%s2764_s1 + $0x578] sm:$0xff] }
  0x8b   :  { %459 = vmatmul.f32.gmra.mxu0 %v1828_v52  ;;  %494 = vmatmul.f32.gmra.mxu1 %v1836_v54  ;;  %v168_v58 = vld [vmem:[%s2764_s1 + $0x410] sm:$0xff]  ;;  %v89_v33 = vld [vmem:[%s2764_s1 + $0x198] sm:$0xff] }
  0x8c   :  { %585 = vmatpush.msra.mxu0 %v56_v43  ;;  %620 = vmatpush.msra.mxu1 %v120_v44  ;;  %v44_v59 = vld [vmem:[%s2764_s1 + $0x30] sm:$0xff]  ;;  %v153_v34 = vld [vmem:[%s2764_s1 + $0x398] sm:$0xff] }
  0x8d   :  { %691 = vmatpush.msra.mxu3 %v244_v45  ;;  %657 = vmatpush.msra.mxu2 %v176_v48  ;;  %v108_v60 = vld [vmem:[%s2764_s1 + $0x230] sm:$0xff]  ;;  %v277_v35 = vld [vmem:[%s2764_s1 + $0x778] sm:$0xff] }
  0x8e   :  { %586 = vmatpush.msra.mxu0 %v52_v49  ;;  %621 = vmatpush.msra.mxu1 %v116_v50  ;;  %v232_v61 = vld [vmem:[%s2764_s1 + $0x610] sm:$0xff]  ;;  %v209_v37 = vld [vmem:[%s2764_s1 + $0x558] sm:$0xff] }
  0x8f   :  { %692 = vmatpush.msra.mxu3 %v240_v51  ;;  %532 = vmatmul.f32.gmra.mxu2 %v1864_v0  ;;  %v40_v3 = vld [vmem:[%s2764_s1 + $0x10] sm:$0xff]  ;;  %v85_v39 = vld [vmem:[%s2764_s1 + $0x178] sm:$0xff] }
  0x90   :  { %567 = vmatmul.f32.gmra.mxu3 %v1869_v1  ;;  %658 = vmatpush.msra.mxu2 %v172_v53  ;;  %v104_v4 = vld [vmem:[%s2764_s1 + $0x210] sm:$0xff]  ;;  %v149_v40 = vld [vmem:[%s2764_s1 + $0x378] sm:$0xff] }
  0x91   :  { %587 = vmatpush.msra.mxu0 %v48_v55  ;;  %622 = vmatpush.msra.mxu1 %v112_v56  ;;  %v273_v41 = vld [vmem:[%s2764_s1 + $0x758] sm:$0xff] }
  0x92   :  { %693 = vmatpush.msra.mxu3 %v236_v57  ;;  %659 = vmatpush.msra.mxu2 %v168_v58  ;;  %v205_v42 = vld [vmem:[%s2764_s1 + $0x538] sm:$0xff] }
  0x93   :  { %462 = vmatmul.f32.gmra.mxu0 %v1888_v8  ;;  %497 = vmatmul.f32.gmra.mxu1 %v1896_v10  ;;  %v81_v43 = vld [vmem:[%s2764_s1 + $0x158] sm:$0xff] }
  0x94   :  { %588 = vmatpush.msra.mxu0 %v44_v59  ;;  %623 = vmatpush.msra.mxu1 %v108_v60  ;;  %v145_v44 = vld [vmem:[%s2764_s1 + $0x358] sm:$0xff] }
  0x95   :  { %694 = vmatpush.msra.mxu3 %v232_v61  ;;  %784 = vmatpush.msrb.mxu2 %v229_v2  ;;  %v269_v45 = vld [vmem:[%s2764_s1 + $0x738] sm:$0xff] }
  0x96   :  { %589 = vmatpush.msra.mxu0 %v40_v3  ;;  %624 = vmatpush.msra.mxu1 %v104_v4  ;;  %v201_v48 = vld [vmem:[%s2764_s1 + $0x518] sm:$0xff] }
  0x97   :  { %819 = vmatpush.msrb.mxu3 %v293_v7  ;;  %535 = vmatmul.f32.gmra.mxu2 %v1924_v21  ;;  %v77_v49 = vld [vmem:[%s2764_s1 + $0x138] sm:$0xff] }
  0x98   :  { %570 = vmatmul.f32.gmra.mxu3 %v1929_v23  ;;  %785 = vmatpush.msrb.mxu2 %v225_v9  ;;  %v141_v50 = vld [vmem:[%s2764_s1 + $0x338] sm:$0xff] }
  0x99   :  { %714 = vmatpush.msrb.mxu0 %v101_v11  ;;  %749 = vmatpush.msrb.mxu1 %v165_v12  ;;  %v265_v51 = vld [vmem:[%s2764_s1 + $0x718] sm:$0xff] }
  0x9a   :  { %820 = vmatpush.msrb.mxu3 %v289_v13  ;;  %786 = vmatpush.msrb.mxu2 %v221_v16  ;;  %v197_v53 = vld [vmem:[%s2764_s1 + $0x4f8] sm:$0xff] }
  0x9b   :  { %465 = vmatmul.f32.gmra.mxu0 %v1948_v28  ;;  %500 = vmatmul.f32.gmra.mxu1 %v1956_v32  ;;  %v73_v55 = vld [vmem:[%s2764_s1 + $0x118] sm:$0xff] }
  0x9c   :  { %715 = vmatpush.msrb.mxu0 %v97_v17  ;;  %750 = vmatpush.msrb.mxu1 %v161_v18  ;;  %v137_v56 = vld [vmem:[%s2764_s1 + $0x318] sm:$0xff] }
  0x9d   :  { %821 = vmatpush.msrb.mxu3 %v285_v19  ;;  %787 = vmatpush.msrb.mxu2 %v217_v24  ;;  %v261_v57 = vld [vmem:[%s2764_s1 + $0x6f8] sm:$0xff] }
  0x9e   :  { %716 = vmatpush.msrb.mxu0 %v93_v25  ;;  %751 = vmatpush.msrb.mxu1 %v157_v26  ;;  %v193_v58 = vld [vmem:[%s2764_s1 + $0x4d8] sm:$0xff] }
  0x9f   :  { %822 = vmatpush.msrb.mxu3 %v281_v27  ;;  %660 = vmatmul.f32.vlgmr.msra.gmra.mxu2 %v1624_v62  ;;  %v69_v59 = vld [vmem:[%s2764_s1 + $0xf8] sm:$0xff] }
  0xa0   :  { %695 = vmatmul.f32.vlgmr.msra.gmra.mxu3 %v1629_v63  ;;  %788 = vmatpush.msrb.mxu2 %v213_v29  ;;  %v133_v60 = vld [vmem:[%s2764_s1 + $0x2f8] sm:$0xff] }
  0xa1   :  { %717 = vmatpush.msrb.mxu0 %v89_v33  ;;  %752 = vmatpush.msrb.mxu1 %v153_v34  ;;  %v257_v61 = vld [vmem:[%s2764_s1 + $0x6d8] sm:$0xff] }
  0xa2   :  { %823 = vmatpush.msrb.mxu3 %v277_v35  ;;  %789 = vmatpush.msrb.mxu2 %v209_v37  ;;  %v189_v2 = vld [vmem:[%s2764_s1 + $0x4b8] sm:$0xff] }
  0xa3   :  { %590 = vmatmul.f32.vlgmr.msra.gmra.mxu0 %v1651_v5  ;;  %625 = vmatmul.f32.vlgmr.msra.gmra.mxu1 %v1656_v6  ;;  %v65_v3 = vld [vmem:[%s2764_s1 + $0xd8] sm:$0xff] }
  0xa4   :  { %718 = vmatpush.msrb.mxu0 %v85_v39  ;;  %753 = vmatpush.msrb.mxu1 %v149_v40  ;;  %v129_v4 = vld [vmem:[%s2764_s1 + $0x2d8] sm:$0xff] }
  0xa5   :  { %824 = vmatpush.msrb.mxu3 %v273_v41  ;;  %790 = vmatpush.msrb.mxu2 %v205_v42  ;;  %v253_v7 = vld [vmem:[%s2764_s1 + $0x6b8] sm:$0xff] }
  0xa6   :  { %719 = vmatpush.msrb.mxu0 %v81_v43  ;;  %754 = vmatpush.msrb.mxu1 %v145_v44  ;;  %v185_v9 = vld [vmem:[%s2764_s1 + $0x498] sm:$0xff] }
  0xa7   :  { %825 = vmatpush.msrb.mxu3 %v269_v45  ;;  %663 = vmatmul.f32.gmra.mxu2 %v1684_v14  ;;  %v61_v11 = vld [vmem:[%s2764_s1 + $0xb8] sm:$0xff] }
  0xa8   :  { %698 = vmatmul.f32.gmra.mxu3 %v1689_v15  ;;  %791 = vmatpush.msrb.mxu2 %v201_v48  ;;  %v125_v12 = vld [vmem:[%s2764_s1 + $0x2b8] sm:$0xff] }
  0xa9   :  { %720 = vmatpush.msrb.mxu0 %v77_v49  ;;  %755 = vmatpush.msrb.mxu1 %v141_v50  ;;  %v249_v13 = vld [vmem:[%s2764_s1 + $0x698] sm:$0xff] }
  0xaa   :  { %826 = vmatpush.msrb.mxu3 %v265_v51  ;;  %792 = vmatpush.msrb.mxu2 %v197_v53  ;;  %v181_v16 = vld [vmem:[%s2764_s1 + $0x478] sm:$0xff] }
  0xab   :  { %593 = vmatmul.f32.gmra.mxu0 %v1708_v20  ;;  %628 = vmatmul.f32.gmra.mxu1 %v1716_v22  ;;  %v57_v17 = vld [vmem:[%s2764_s1 + $0x98] sm:$0xff] }
  0xac   :  { %721 = vmatpush.msrb.mxu0 %v73_v55  ;;  %756 = vmatpush.msrb.mxu1 %v137_v56  ;;  %v121_v18 = vld [vmem:[%s2764_s1 + $0x298] sm:$0xff] }
  0xad   :  { %827 = vmatpush.msrb.mxu3 %v261_v57  ;;  %793 = vmatpush.msrb.mxu2 %v193_v58  ;;  %v245_v19 = vld [vmem:[%s2764_s1 + $0x678] sm:$0xff] }
  0xae   :  { %722 = vmatpush.msrb.mxu0 %v69_v59  ;;  %757 = vmatpush.msrb.mxu1 %v133_v60  ;;  %v177_v24 = vld [vmem:[%s2764_s1 + $0x458] sm:$0xff] }
  0xaf   :  { %828 = vmatpush.msrb.mxu3 %v257_v61  ;;  %666 = vmatmul.f32.gmra.mxu2 %v1744_v30  ;;  %v53_v25 = vld [vmem:[%s2764_s1 + $0x78] sm:$0xff] }
  0xb0   :  { %701 = vmatmul.f32.gmra.mxu3 %v1749_v31  ;;  %794 = vmatpush.msrb.mxu2 %v189_v2  ;;  %v117_v26 = vld [vmem:[%s2764_s1 + $0x278] sm:$0xff] }
  0xb1   :  { %723 = vmatpush.msrb.mxu0 %v65_v3  ;;  %758 = vmatpush.msrb.mxu1 %v129_v4  ;;  %v241_v27 = vld [vmem:[%s2764_s1 + $0x658] sm:$0xff] }
  0xb2   :  { %829 = vmatpush.msrb.mxu3 %v253_v7  ;;  %795 = vmatpush.msrb.mxu2 %v185_v9  ;;  %v173_v29 = vld [vmem:[%s2764_s1 + $0x438] sm:$0xff] }
  0xb3   :  { %596 = vmatmul.f32.gmra.mxu0 %v1768_v36  ;;  %631 = vmatmul.f32.gmra.mxu1 %v1776_v38  ;;  %v49_v33 = vld [vmem:[%s2764_s1 + $0x58] sm:$0xff] }
  0xb4   :  { %724 = vmatpush.msrb.mxu0 %v61_v11  ;;  %759 = vmatpush.msrb.mxu1 %v125_v12  ;;  %v113_v34 = vld [vmem:[%s2764_s1 + $0x258] sm:$0xff] }
  0xb5   :  { %830 = vmatpush.msrb.mxu3 %v249_v13  ;;  %796 = vmatpush.msrb.mxu2 %v181_v16  ;;  %v237_v35 = vld [vmem:[%s2764_s1 + $0x638] sm:$0xff] }
  0xb6   :  { %725 = vmatpush.msrb.mxu0 %v57_v17  ;;  %760 = vmatpush.msrb.mxu1 %v121_v18  ;;  %v169_v37 = vld [vmem:[%s2764_s1 + $0x418] sm:$0xff]  ;;  %v902_v17 = vld [vmem:[%s2766_s2 + $0x60] sm:$0xff] }
  0xb7   :  { %831 = vmatpush.msrb.mxu3 %v245_v19  ;;  %669 = vmatmul.f32.gmra.mxu2 %v1804_v46  ;;  %v45_v39 = vld [vmem:[%s2764_s1 + $0x38] sm:$0xff] }
  0xb8   :  { %704 = vmatmul.f32.gmra.mxu3 %v1809_v47  ;;  %797 = vmatpush.msrb.mxu2 %v177_v24  ;;  %v109_v40 = vld [vmem:[%s2764_s1 + $0x238] sm:$0xff] }
  0xb9   :  { %726 = vmatpush.msrb.mxu0 %v53_v25  ;;  %761 = vmatpush.msrb.mxu1 %v117_v26  ;;  %v233_v41 = vld [vmem:[%s2764_s1 + $0x618] sm:$0xff]  ;;  %v900_v25 = vld [vmem:[%s2766_s2 + $0x50] sm:$0xff] }
  0xba   :  { %832 = vmatpush.msrb.mxu3 %v241_v27  ;;  %798 = vmatpush.msrb.mxu2 %v173_v29  ;;  %v41_v42 = vld [vmem:[%s2764_s1 + $0x18] sm:$0xff]  ;;  %v898_v29 = vld [vmem:[%s2766_s2 + $0x40] sm:$0xff] }
  0xbb   :  { %599 = vmatmul.f32.gmra.mxu0 %v1828_v52  ;;  %634 = vmatmul.f32.gmra.mxu1 %v1836_v54  ;;  %v105_v43 = vld [vmem:[%s2764_s1 + $0x218] sm:$0xff] }
  0xbc   :  { %727 = vmatpush.msrb.mxu0 %v49_v33  ;;  %762 = vmatpush.msrb.mxu1 %v113_v34 }
  0xbd   :  { %833 = vmatpush.msrb.mxu3 %v237_v35  ;;  %799 = vmatpush.msrb.mxu2 %v169_v37  ;;  %v896_v37 = vld [vmem:[%s2766_s2 + $0x30] sm:$0xff] }
  0xbe   :  { %728 = vmatpush.msrb.mxu0 %v45_v39  ;;  %763 = vmatpush.msrb.mxu1 %v109_v40 }
  0xbf   :  { %834 = vmatpush.msrb.mxu3 %v233_v41  ;;  %672 = vmatmul.f32.gmra.mxu2 %v1864_v0  ;;  %v894_v41 = vld [vmem:[%s2766_s2 + $0x20] sm:$0xff] }
  0xc0   :  { %v2388_v44 = vpop.f32.mrf.mxu0  ;;  %707 = vmatmul.f32.gmra.mxu3 %v1869_v1  ;;  %v2391_v45 = vpop.f32.mrf.mxu1  ;;  %729 = vmatpush.msrb.mxu0 %v41_v42 }
  0xc1   :  { %764 = vmatpush.msrb.mxu1 %v105_v43 }
  0xc2   :  { %v2393_v48 = vpop.f32.mrf.mxu2 }
  0xc3   :  { %602 = vmatmul.f32.gmra.mxu0 %v1888_v8  ;;  %v2396_v49 = vpop.f32.mrf.mxu3  ;;  %637 = vmatmul.f32.gmra.mxu1 %v1896_v10 }
  0xc7   :  { %675 = vmatmul.f32.gmra.mxu2 %v1924_v21 }
  0xc8   :  { %v2400_v50 = vpop.f32.mrf.mxu0  ;;  %710 = vmatmul.f32.gmra.mxu3 %v1929_v23  ;;  %v2403_v51 = vpop.f32.mrf.mxu1 }
  0xca   :  { %v2405_v53 = vpop.f32.mrf.mxu2 }
  0xcb   :  { %605 = vmatmul.f32.gmra.mxu0 %v1948_v28  ;;  %v2408_v55 = vpop.f32.mrf.mxu3  ;;  %640 = vmatmul.f32.gmra.mxu1 %v1956_v32 }
  0xcf   :  { %800 = vmatmul.f32.vlgmr.msrb.gmra.mxu2 %v1624_v62 }
  0xd0   :  { %v2412_v56 = vpop.f32.mrf.mxu0  ;;  %835 = vmatmul.f32.vlgmr.msrb.gmra.mxu3 %v1629_v63  ;;  %v2415_v57 = vpop.f32.mrf.mxu1 }
  0xd2   :  { %v2417_v58 = vpop.f32.mrf.mxu2 }
  0xd3   :  { %730 = vmatmul.f32.vlgmr.msrb.gmra.mxu0 %v1651_v5  ;;  %v2420_v59 = vpop.f32.mrf.mxu3  ;;  %765 = vmatmul.f32.vlgmr.msrb.gmra.mxu1 %v1656_v6 }
  0xd7   :  { %803 = vmatmul.f32.gmra.mxu2 %v1684_v14 }
  0xd8   :  { %v320_v60 = vpop.f32.mrf.mxu0  ;;  %838 = vmatmul.f32.gmra.mxu3 %v1689_v15  ;;  %v355_v62 = vpop.f32.mrf.mxu1 }
  0xd9   :  { %v356_v61 = vadd.f32 %v355_v62, %v320_v60  ;;  %v893_v62 = vld [vmem:[%s2766_s2 + $0x18] sm:$0xff] }
  0xda   :  { %v390_v2 = vpop.f32.mrf.mxu2 }
  0xdb   :  { %733 = vmatmul.f32.gmra.mxu0 %v1708_v20  ;;  %v425_v63 = vpop.f32.mrf.mxu3  ;;  %v391_v3 = vadd.f32 %v390_v2, %v356_v61  ;;  %768 = vmatmul.f32.gmra.mxu1 %v1716_v22  ;;  %v892_v2 = vld [vmem:[%s2766_s2 + $0x10] sm:$0xff] }
  0xdd   :  { %v2427_v4 = vadd.f32 %v425_v63, %v391_v3  ;;  %v891_v3 = vld [vmem:[%s2766_s2 + $0x8] sm:$0xff] }
  0xdf   :  { %806 = vmatmul.f32.gmra.mxu2 %v1744_v30 }
  0xe0   :  { %v323_v5 = vpop.f32.mrf.mxu0  ;;  %841 = vmatmul.f32.gmra.mxu3 %v1749_v31  ;;  %v358_v6 = vpop.f32.mrf.mxu1 }
  0xe1   :  { %v359_v14 = vadd.f32 %v358_v6, %v323_v5 }
  0xe2   :  { %v393_v7 = vpop.f32.mrf.mxu2 }
  0xe3   :  { %736 = vmatmul.f32.gmra.mxu0 %v1768_v36  ;;  %v428_v15 = vpop.f32.mrf.mxu3  ;;  %v394_v9 = vadd.f32 %v393_v7, %v359_v14  ;;  %771 = vmatmul.f32.gmra.mxu1 %v1776_v38  ;;  %v905_v36 = vld [vmem:[%s2766_s2 + $0x78] sm:$0xff]  ;;  %v890_v14 = vld [vmem:[%s2766_s2] sm:$0xff] }
  0xe4   :  { %922 = vmatpush.msra.mxu0 %v905_v36  ;;  %1344 = vmatpush.msra.mxu2 %v905_v36 }
  0xe5   :  { %v2433_v20 = vadd.f32 %v428_v15, %v394_v9 }
  0xe7   :  { %809 = vmatmul.f32.gmra.mxu2 %v1804_v46  ;;  %v904_v46 = vld [vmem:[%s2766_s2 + $0x70] sm:$0xff] }
  0xe8   :  { %v326_v22 = vpop.f32.mrf.mxu0  ;;  %844 = vmatmul.f32.gmra.mxu3 %v1809_v47  ;;  %v361_v30 = vpop.f32.mrf.mxu1  ;;  %923 = vmatpush.msra.mxu0 %v904_v46 }
  0xe9   :  { %v362_v11 = vadd.f32 %v361_v30, %v326_v22  ;;  %1345 = vmatpush.msra.mxu2 %v904_v46 }
  0xea   :  { %v396_v12 = vpop.f32.mrf.mxu2 }
  0xeb   :  { %739 = vmatmul.f32.gmra.mxu0 %v1828_v52  ;;  %v431_v31 = vpop.f32.mrf.mxu3  ;;  %v397_v13 = vadd.f32 %v396_v12, %v362_v11  ;;  %774 = vmatmul.f32.gmra.mxu1 %v1836_v54  ;;  %v903_v52 = vld [vmem:[%s2766_s2 + $0x68] sm:$0xff] }
  0xec   :  { %924 = vmatpush.msra.mxu0 %v903_v52  ;;  %1346 = vmatpush.msra.mxu2 %v903_v52 }
  0xed   :  { %v2442_v38 = vadd.f32 %v431_v31, %v397_v13  ;;  %v921_v31 = vld [vmem:[%s2766_s2 + $0xf8] sm:$0xff] }
  0xee   :  { %1347 = vmatpush.msra.mxu2 %v902_v17  ;;  %925 = vmatpush.msra.mxu0 %v902_v17  ;;  %v920_v17 = vld [vmem:[%s2766_s2 + $0xf0] sm:$0xff] }
  0xef   :  { %812 = vmatmul.f32.gmra.mxu2 %v1864_v0  ;;  %957 = vmatpush.msra.mxu1 %v921_v31 }
  0xf0   :  { %v451_v47 = vpop.f32.mrf.mxu0  ;;  %847 = vmatmul.f32.gmra.mxu3 %v1869_v1  ;;  %v486_v54 = vpop.f32.mrf.mxu1  ;;  %v901_v1 = vld [vmem:[%s2766_s2 + $0x58] sm:$0xff] }
  0xf1   :  { %v487_v16 = vadd.f32 %v486_v54, %v451_v47  ;;  %1348 = vmatpush.msra.mxu2 %v901_v1  ;;  %926 = vmatpush.msra.mxu0 %v901_v1  ;;  %v347_v1 = vadd.f32 %v2391_v45, %v2388_v44  ;;  %v917_v44 = vld [vmem:[%s2766_s2 + $0xd8] sm:$0xff]  ;;  %v916_v45 = vld [vmem:[%s2766_s2 + $0xd0] sm:$0xff] }
  0xf2   :  { %v521_v18 = vpop.f32.mrf.mxu2  ;;  %1360 = vmatpush.msra.mxu3 %v921_v31  ;;  %958 = vmatpush.msra.mxu1 %v920_v17 }
  0xf3   :  { %742 = vmatmul.f32.gmra.mxu0 %v1888_v8  ;;  %v556_v19 = vpop.f32.mrf.mxu3  ;;  %v522_v0 = vadd.f32 %v521_v18, %v487_v16  ;;  %777 = vmatmul.f32.gmra.mxu1 %v1896_v10  ;;  %v899_v10 = vld [vmem:[%s2766_s2 + $0x48] sm:$0xff] }
  0xf4   :  { %1349 = vmatpush.msra.mxu2 %v900_v25  ;;  %927 = vmatpush.msra.mxu0 %v900_v25  ;;  %v919_v18 = vld [vmem:[%s2766_s2 + $0xe8] sm:$0xff] }
  0xf5   :  { %v2460_v24 = vadd.f32 %v556_v19, %v522_v0  ;;  %1361 = vmatpush.msra.mxu3 %v920_v17  ;;  %959 = vmatpush.msra.mxu1 %v919_v18 }
  0xf6   :  { %1350 = vmatpush.msra.mxu2 %v899_v10  ;;  %928 = vmatpush.msra.mxu0 %v899_v10 }
  0xf7   :  { %815 = vmatmul.f32.gmra.mxu2 %v1924_v21  ;;  %1362 = vmatpush.msra.mxu3 %v919_v18 }
  0xf8   :  { %v454_v8 = vpop.f32.mrf.mxu0  ;;  %850 = vmatmul.f32.gmra.mxu3 %v1929_v23  ;;  %v489_v26 = vpop.f32.mrf.mxu1  ;;  %1351 = vmatpush.msra.mxu2 %v898_v29  ;;  %v897_v23 = vld [vmem:[%s2766_s2 + $0x38] sm:$0xff] }
  0xf9   :  { %v490_v27 = vadd.f32 %v489_v26, %v454_v8  ;;  %929 = vmatpush.msra.mxu0 %v898_v29  ;;  %v918_v8 = vld [vmem:[%s2766_s2 + $0xe0] sm:$0xff]  ;;  %v382_v26 = vadd.f32 %v2393_v48, %v347_v1  ;;  %v350_v48 = vadd.f32 %v2403_v51, %v2400_v50  ;;  %v913_v51 = vld [vmem:[%s2766_s2 + $0xb8] sm:$0xff] }
  0xfa   :  { %v524_v33 = vpop.f32.mrf.mxu2  ;;  %1352 = vmatpush.msra.mxu2 %v897_v23  ;;  %960 = vmatpush.msra.mxu1 %v918_v8  ;;  %v914_v50 = vld [vmem:[%s2766_s2 + $0xc0] sm:$0xff] }
  0xfb   :  { %745 = vmatmul.f32.gmra.mxu0 %v1948_v28  ;;  %v559_v34 = vpop.f32.mrf.mxu3  ;;  %v525_v21 = vadd.f32 %v524_v33, %v490_v27  ;;  %780 = vmatmul.f32.gmra.mxu1 %v1956_v32  ;;  %v895_v32 = vld [vmem:[%s2766_s2 + $0x28] sm:$0xff]  ;;  %v906_v1 = vld [vmem:[%s2766_s2 + $0x80] sm:$0xff] }
  0xfc   :  { %1353 = vmatpush.msra.mxu2 %v896_v37  ;;  %930 = vmatpush.msra.mxu0 %v897_v23  ;;  %v417_v23 = vadd.f32 %v2396_v49, %v382_v26 }
  0xfd   :  { %v2478_v35 = vadd.f32 %v559_v34, %v525_v21  ;;  %1363 = vmatpush.msra.mxu3 %v918_v8  ;;  %961 = vmatpush.msra.mxu1 %v917_v44 }
  0xfe   :  { %1354 = vmatpush.msra.mxu2 %v895_v32  ;;  %931 = vmatpush.msra.mxu0 %v896_v37 }
  0xff   :  { %1364 = vmatpush.msra.mxu3 %v917_v44  ;;  %962 = vmatpush.msra.mxu1 %v916_v45 }
 0x100   :  { %v457_v28 = vpop.f32.mrf.mxu0  ;;  %v492_v39 = vpop.f32.mrf.mxu1  ;;  %1355 = vmatpush.msra.mxu2 %v894_v41  ;;  %932 = vmatpush.msra.mxu0 %v895_v32 }
 0x101   :  { %v493_v40 = vadd.f32 %v492_v39, %v457_v28  ;;  %v915_v28 = vld [vmem:[%s2766_s2 + $0xc8] sm:$0xff]  ;;  %1365 = vmatpush.msra.mxu3 %v916_v45  ;;  %v854_v39 = vmul.f32 %v417_v23, %v417_v23 }
 0x102   :  { %v527_v42 = vpop.f32.mrf.mxu2  ;;  %1356 = vmatpush.msra.mxu2 %v893_v62  ;;  %933 = vmatpush.msra.mxu0 %v894_v41 }
 0x103   :  { %v562_v43 = vpop.f32.mrf.mxu3  ;;  %v528_v60 = vadd.f32 %v527_v42, %v493_v40  ;;  %963 = vmatpush.msra.mxu1 %v915_v28  ;;  %1366 = vmatpush.msra.mxu3 %v915_v28  ;;  %v385_v40 = vadd.f32 %v2405_v53, %v350_v48  ;;  %v353_v53 = vadd.f32 %v2415_v57, %v2412_v56 }
 0x104   :  { %1357 = vmatpush.msra.mxu2 %v892_v2  ;;  %934 = vmatpush.msra.mxu0 %v893_v62 }
 0x105   :  { %v2492_v61 = vadd.f32 %v562_v43, %v528_v60  ;;  %964 = vmatpush.msra.mxu1 %v914_v50  ;;  %1367 = vmatpush.msra.mxu3 %v914_v50 }
 0x106   :  { %1358 = vmatpush.msra.mxu2 %v891_v3  ;;  %935 = vmatpush.msra.mxu0 %v892_v2 }
 0x107   :  { %965 = vmatpush.msra.mxu1 %v913_v51  ;;  %1368 = vmatpush.msra.mxu3 %v913_v51  ;;  %v864_v51 = vmul.f32 %v2442_v38, %v2442_v38 }
 0x108   :  { %v460_v63 = vpop.f32.mrf.mxu0  ;;  %v495_v5 = vpop.f32.mrf.mxu1  ;;  %1359 = vmatpush.msra.mxu2 %v890_v14  ;;  %936 = vmatpush.msra.mxu0 %v891_v3 }
 0x109   :  { %v496_v6 = vadd.f32 %v495_v5, %v460_v63  ;;  %v420_v63 = vadd.f32 %v2408_v55, %v385_v40  ;;  %v911_v55 = vld [vmem:[%s2766_s2 + $0xa8] sm:$0xff] }
 0x10a   :  { %v530_v7 = vpop.f32.mrf.mxu2  ;;  %937 = vmatpush.msra.mxu0 %v890_v14 }
 0x10b   :  { %v565_v15 = vpop.f32.mrf.mxu3  ;;  %v531_v9 = vadd.f32 %v530_v7, %v496_v6  ;;  %v912_v6 = vld [vmem:[%s2766_s2 + $0xb0] sm:$0xff]  ;;  %v856_v14 = vmul.f32 %v420_v63, %v420_v63  ;;  %v388_v7 = vadd.f32 %v2417_v58, %v353_v53 }
 0x10c   :  { %966 = vmatpush.msra.mxu1 %v912_v6  ;;  %1369 = vmatpush.msra.mxu3 %v912_v6 }
 0x10d   :  { %v2503_v22 = vadd.f32 %v565_v15, %v531_v9  ;;  %v423_v58 = vadd.f32 %v2420_v59, %v388_v7  ;;  %v907_v59 = vld [vmem:[%s2766_s2 + $0x88] sm:$0xff]  ;;  %v855_v7 = vmul.f32 %v2460_v24, %v2460_v24 }
 0x10e   :  { %967 = vmatpush.msra.mxu1 %v911_v55  ;;  %1370 = vmatpush.msra.mxu3 %v911_v55 }
 0x110   :  { %v463_v30 = vpop.f32.mrf.mxu0  ;;  %v498_v11 = vpop.f32.mrf.mxu1 }
 0x111   :  { %v499_v12 = vadd.f32 %v498_v11, %v463_v30  ;;  %v910_v11 = vld [vmem:[%s2766_s2 + $0xa0] sm:$0xff] }
 0x112   :  { %v533_v13 = vpop.f32.mrf.mxu2  ;;  %968 = vmatpush.msra.mxu1 %v910_v11  ;;  %1371 = vmatpush.msra.mxu3 %v910_v11 }
 0x113   :  { %v568_v36 = vpop.f32.mrf.mxu3  ;;  %v534_v46 = vadd.f32 %v533_v13, %v499_v12 }
 0x115   :  { %v2508_v47 = vadd.f32 %v568_v36, %v534_v46  ;;  %v909_v36 = vld [vmem:[%s2766_s2 + $0x98] sm:$0xff] }
 0x116   :  { %969 = vmatpush.msra.mxu1 %v909_v36  ;;  %1372 = vmatpush.msra.mxu3 %v909_v36 }
 0x118   :  { %v466_v52 = vpop.f32.mrf.mxu0  ;;  %v501_v54 = vpop.f32.mrf.mxu1 }
 0x119   :  { %v502_v16 = vadd.f32 %v501_v54, %v466_v52  ;;  %v908_v52 = vld [vmem:[%s2766_s2 + $0x90] sm:$0xff]  ;;  %v858_v54 = vmul.f32 %v423_v58, %v423_v58  ;;  %s1413_s2 = smov 104  }
 0x11a   :  { %v536_v19 = vpop.f32.mrf.mxu2  ;;  %970 = vmatpush.msra.mxu1 %v908_v52  ;;  %1373 = vmatpush.msra.mxu3 %v908_v52 }
 0x11b   :  { %v571_v0 = vpop.f32.mrf.mxu3  ;;  %v537_v25 = vadd.f32 %v536_v19, %v502_v16 }
 0x11c   :  { %971 = vmatpush.msra.mxu1 %v907_v59  ;;  %1374 = vmatpush.msra.mxu3 %v907_v59  ;;  %v859_v59 = vmul.f32 %v2492_v61, %v2492_v61 }
 0x11d   :  { %v2521_v10 = vadd.f32 %v571_v0, %v537_v25 }
 0x11e   :  { %972 = vmatpush.msra.mxu1 %v906_v1  ;;  %1375 = vmatpush.msra.mxu3 %v906_v1 }
 0x120   :  { %v591_v27 = vpop.f32.mrf.mxu0  ;;  %v626_v29 = vpop.f32.mrf.mxu1 }
 0x121   :  { %v627_v33 = vadd.f32 %v626_v29, %v591_v27  ;;  %v860_v29 = vmul.f32 %v2427_v4, %v2427_v4 }
 0x122   :  { %v661_v34 = vpop.f32.mrf.mxu2 }
 0x123   :  { %v696_v21 = vpop.f32.mrf.mxu3  ;;  %v662_v37 = vadd.f32 %v661_v34, %v627_v33 }
 0x125   :  { %v697_v32 = vadd.f32 %v696_v21, %v662_v37 }
 0x127   :  { %v866_v41 = vmul.f32 %v697_v32, %v697_v32  ;;  %v862_v32 = vmul.f32 %v2433_v20, %v2433_v20 }
 0x128   :  { %v594_v42 = vpop.f32.mrf.mxu0  ;;  %v629_v43 = vpop.f32.mrf.mxu1 }
 0x129   :  { %v878_v49 = vadd.f32 %v866_v41, %v854_v39  ;;  %v630_v60 = vadd.f32 %v629_v43, %v594_v42 }
 0x12a   :  { %v664_v62 = vpop.f32.mrf.mxu2 }
 0x12b   :  { %v699_v2 = vpop.f32.mrf.mxu3  ;;  %v665_v3 = vadd.f32 %v664_v62, %v630_v60  ;;  %938 = vmatmul.f32.vlgmr.msra.gmra.mxu0 %v878_v49 }
 0x12d   :  { %v700_v5 = vadd.f32 %v699_v2, %v665_v3 }
 0x12f   :  { %v868_v15 = vmul.f32 %v700_v5, %v700_v5 }
 0x130   :  { %v597_v9 = vpop.f32.mrf.mxu0  ;;  %v632_v56 = vpop.f32.mrf.mxu1 }
 0x131   :  { %v880_v57 = vadd.f32 %v868_v15, %v856_v14  ;;  %v633_v30 = vadd.f32 %v632_v56, %v597_v9 }
 0x132   :  { %v667_v12 = vpop.f32.mrf.mxu2 }
 0x133   :  { %v702_v31 = vpop.f32.mrf.mxu3  ;;  %v668_v13 = vadd.f32 %v667_v12, %v633_v30  ;;  %941 = vmatmul.f32.gmra.mxu0 %v880_v57 }
 0x135   :  { %v703_v46 = vadd.f32 %v702_v31, %v668_v13  ;;  %v857_v31 = vmul.f32 %v2478_v35, %v2478_v35 }
 0x137   :  { %v870_v16 = vmul.f32 %v703_v46, %v703_v46 }
 0x138   :  { %v600_v17 = vpop.f32.mrf.mxu0  ;;  %v635_v18 = vpop.f32.mrf.mxu1 }
 0x139   :  { %v882_v19 = vadd.f32 %v870_v16, %v858_v54  ;;  %v636_v0 = vadd.f32 %v635_v18, %v600_v17 }
 0x13a   :  { %v670_v25 = vpop.f32.mrf.mxu2 }
 0x13b   :  { %v705_v8 = vpop.f32.mrf.mxu3  ;;  %v671_v26 = vadd.f32 %v670_v25, %v636_v0  ;;  %944 = vmatmul.f32.gmra.mxu0 %v882_v19 }
 0x13d   :  { %v706_v27 = vadd.f32 %v705_v8, %v671_v26 }
 0x13f   :  { %v872_v33 = vmul.f32 %v706_v27, %v706_v27 }
 0x140   :  { %v603_v44 = vpop.f32.mrf.mxu0  ;;  %v638_v45 = vpop.f32.mrf.mxu1 }
 0x141   :  { %v884_v34 = vadd.f32 %v872_v33, %v860_v29  ;;  %v639_v21 = vadd.f32 %v638_v45, %v603_v44  ;;  %v861_v29 = vmul.f32 %v2503_v22, %v2503_v22 }
 0x142   :  { %v673_v23 = vpop.f32.mrf.mxu2 }
 0x143   :  { %v708_v48 = vpop.f32.mrf.mxu3  ;;  %v674_v37 = vadd.f32 %v673_v23, %v639_v21  ;;  %947 = vmatmul.f32.vlgmr.msra.gmra.mxu2 %v884_v34 }
 0x145   :  { %v709_v28 = vadd.f32 %v708_v48, %v674_v37 }
 0x147   :  { %v874_v39 = vmul.f32 %v709_v28, %v709_v28  ;;  %v863_v28 = vmul.f32 %v2508_v47, %v2508_v47 }
 0x148   :  { %v606_v40 = vpop.f32.mrf.mxu0  ;;  %v641_v41 = vpop.f32.mrf.mxu1 }
 0x149   :  { %v886_v42 = vadd.f32 %v874_v39, %v862_v32  ;;  %v642_v43 = vadd.f32 %v641_v41, %v606_v40 }
 0x14a   :  { %v676_v49 = vpop.f32.mrf.mxu2 }
 0x14b   :  { %v711_v4 = vpop.f32.mrf.mxu3  ;;  %v677_v60 = vadd.f32 %v676_v49, %v642_v43  ;;  %950 = vmatmul.f32.gmra.mxu2 %v886_v42 }
 0x14d   :  { %v712_v50 = vadd.f32 %v711_v4, %v677_v60  ;;  %v865_v60 = vmul.f32 %v2521_v10, %v2521_v10 }
 0x14f   :  { %v876_v62 = vmul.f32 %v712_v50, %v712_v50 }
 0x150   :  { %v731_v2 = vpop.f32.mrf.mxu0  ;;  %v766_v63 = vpop.f32.mrf.mxu1 }
 0x151   :  { %v888_v53 = vadd.f32 %v876_v62, %v864_v51  ;;  %v767_v3 = vadd.f32 %v766_v63, %v731_v2 }
 0x152   :  { %v801_v5 = vpop.f32.mrf.mxu2 }
 0x153   :  { %v836_v20 = vpop.f32.mrf.mxu3  ;;  %v802_v6 = vadd.f32 %v801_v5, %v767_v3  ;;  %953 = vmatmul.f32.gmra.mxu2 %v888_v53 }
 0x155   :  { %v837_v14 = vadd.f32 %v836_v20, %v802_v6 }
 0x157   :  { %v867_v15 = vmul.f32 %v837_v14, %v837_v14 }
 0x158   :  { %v734_v9 = vpop.f32.mrf.mxu0  ;;  %v769_v55 = vpop.f32.mrf.mxu1 }
 0x159   :  { %v879_v56 = vadd.f32 %v867_v15, %v855_v7  ;;  %v770_v57 = vadd.f32 %v769_v55, %v734_v9 }
 0x15a   :  { %v804_v30 = vpop.f32.mrf.mxu2 }
 0x15b   :  { %v839_v38 = vpop.f32.mrf.mxu3  ;;  %v805_v11 = vadd.f32 %v804_v30, %v770_v57  ;;  %973 = vmatmul.f32.vlgmr.msra.gmra.mxu1 %v879_v56 }
 0x15d   :  { %v840_v12 = vadd.f32 %v839_v38, %v805_v11 }
 0x15f   :  { %v869_v58 = vmul.f32 %v840_v12, %v840_v12 }
 0x160   :  { %v737_v13 = vpop.f32.mrf.mxu0  ;;  %v772_v36 = vpop.f32.mrf.mxu1 }
 0x161   :  { %v881_v46 = vadd.f32 %v869_v58, %v857_v31  ;;  %v773_v52 = vadd.f32 %v772_v36, %v737_v13 }
 0x162   :  { %v807_v54 = vpop.f32.mrf.mxu2 }
 0x163   :  { %v842_v24 = vpop.f32.mrf.mxu3  ;;  %v808_v16 = vadd.f32 %v807_v54, %v773_v52  ;;  %976 = vmatmul.f32.gmra.mxu1 %v881_v46 }
 0x165   :  { %v843_v17 = vadd.f32 %v842_v24, %v808_v16 }
 0x167   :  { %v871_v18 = vmul.f32 %v843_v17, %v843_v17 }
 0x168   :  { %v740_v19 = vpop.f32.mrf.mxu0  ;;  %v775_v0 = vpop.f32.mrf.mxu1 }
 0x169   :  { %v883_v1 = vadd.f32 %v871_v18, %v859_v59  ;;  %v776_v25 = vadd.f32 %v775_v0, %v740_v19 }
 0x16a   :  { %v810_v8 = vpop.f32.mrf.mxu2 }
 0x16b   :  { %v845_v35 = vpop.f32.mrf.mxu3  ;;  %v811_v26 = vadd.f32 %v810_v8, %v776_v25  ;;  %979 = vmatmul.f32.gmra.mxu1 %v883_v1 }
 0x16d   :  { %v846_v27 = vadd.f32 %v845_v35, %v811_v26 }
 0x16f   :  { %v873_v33 = vmul.f32 %v846_v27, %v846_v27 }
 0x170   :  { %v743_v44 = vpop.f32.mrf.mxu0  ;;  %v778_v45 = vpop.f32.mrf.mxu1 }
 0x171   :  { %v885_v34 = vadd.f32 %v873_v33, %v861_v29  ;;  %v779_v21 = vadd.f32 %v778_v45, %v743_v44 }
 0x172   :  { %v813_v23 = vpop.f32.mrf.mxu2 }
 0x173   :  { %v848_v61 = vpop.f32.mrf.mxu3  ;;  %v814_v48 = vadd.f32 %v813_v23, %v779_v21  ;;  %982 = vmatmul.f32.vlgmr.msra.gmra.mxu3 %v885_v34 }
 0x175   :  { %v849_v37 = vadd.f32 %v848_v61, %v814_v48 }
 0x177   :  { %v875_v32 = vmul.f32 %v849_v37, %v849_v37 }
 0x178   :  { %v746_v39 = vpop.f32.mrf.mxu0  ;;  %v781_v40 = vpop.f32.mrf.mxu1 }
 0x179   :  { %v887_v41 = vadd.f32 %v875_v32, %v863_v28  ;;  %v782_v42 = vadd.f32 %v781_v40, %v746_v39  ;;  %v1414_v39 = vmov 21.0  }
 0x17a   :  { %v816_v43 = vpop.f32.mrf.mxu2 }
 0x17b   :  { %v851_v22 = vpop.f32.mrf.mxu3  ;;  %v817_v49 = vadd.f32 %v816_v43, %v782_v42  ;;  %985 = vmatmul.f32.gmra.mxu3 %v887_v41 }
 0x17d   :  { %v852_v4 = vadd.f32 %v851_v22, %v817_v49 }
 0x17f   :  { %v877_v50 = vmul.f32 %v852_v4, %v852_v4 }
 0x181   :  { %v889_v51 = vadd.f32 %v877_v50, %v865_v60 }
 0x183   :  { %988 = vmatmul.f32.gmra.mxu3 %v889_v51 }
 0x1a8   :  { %v939_v62 = vpop.f32.mrf.mxu0 }
 0x1a9   :  { %v940_v2 = vadd.f32 1e-06, %v939_v62 }
 0x1b0   :  { %v942_v53 = vpop.f32.mrf.mxu0 }
 0x1b1   :  { %v943_v3 = vadd.f32 1e-06, %v942_v53 }
 0x1b8   :  { %v945_v7 = vpop.f32.mrf.mxu0 }
 0x1b9   :  { %v946_v15 = vadd.f32 1e-06, %v945_v7 }
 0x1c6   :  { %v948_v57 = vpop.f32.mrf.mxu2 }
 0x1c7   :  { %v949_v11 = vadd.f32 1e-06, %v948_v57 }
 0x1ce   :  { %v951_v58 = vpop.f32.mrf.mxu2 }
 0x1cf   :  { %v952_v13 = vadd.f32 1e-06, %v951_v58 }
 0x1d6   :  { %v954_v24 = vpop.f32.mrf.mxu2 }
 0x1d7   :  { %v955_v16 = vadd.f32 1e-06, %v954_v24 }
 0x1d8   :  { %v974_v63 = vpop.f32.mrf.mxu1 }
 0x1d9   :  { %v975_v47 = vadd.f32 %v974_v63, %v940_v2 }
 0x1db   :  { %1379 = vlog2.f32 %v975_v47 }
 0x1e0   :  { %v977_v5 = vpop.f32.mrf.mxu1 }
 0x1e1   :  { %v1380_v20 = vpop.eup %1379  ;;  %v978_v6 = vadd.f32 %v977_v5, %v943_v3 }
 0x1e2   :  { %v993_v14 = vmul.f32 0.6931472, %v1380_v20 }
 0x1e3   :  { %1381 = vlog2.f32 %v978_v6 }
 0x1e4   :  { %1004 = vxpose.xlu0.b32.start [1/6] (short) (narrow) %v993_v14, 40 }
 0x1e8   :  { %v980_v9 = vpop.f32.mrf.mxu1 }
 0x1e9   :  { %v1382_v10 = vpop.eup %1381  ;;  %v981_v55 = vadd.f32 %v980_v9, %v946_v15 }
 0x1ea   :  { %v995_v56 = vmul.f32 0.6931472, %v1382_v10 }
 0x1eb   :  { %1383 = vlog2.f32 %v981_v55 }
 0x1ec   :  { %1005 = vxpose.xlu0.b32.cont [2/6] (short) (narrow) %v995_v56, 40 }
 0x1f1   :  { %v1384_v30 = vpop.eup %1383 }
 0x1f2   :  { %v997_v38 = vmul.f32 0.6931472, %v1384_v30 }
 0x1f4   :  { %1006 = vxpose.xlu0.b32.cont [3/6] (short) (narrow) %v997_v38, 40 }
 0x1f6   :  { %v983_v12 = vpop.f32.mrf.mxu3 }
 0x1f7   :  { %v984_v31 = vadd.f32 %v983_v12, %v949_v11 }
 0x1f9   :  { %1385 = vlog2.f32 %v984_v31 }
 0x1fe   :  { %v986_v36 = vpop.f32.mrf.mxu3 }
 0x1ff   :  { %v1386_v46 = vpop.eup %1385  ;;  %v987_v52 = vadd.f32 %v986_v36, %v952_v13 }
 0x200   :  { %v999_v54 = vmul.f32 0.6931472, %v1386_v46 }
 0x201   :  { %1387 = vlog2.f32 %v987_v52 }
 0x202   :  { %1007 = vxpose.xlu0.b32.cont [4/6] (short) (narrow) %v999_v54, 40 }
 0x206   :  { %v989_v17 = vpop.f32.mrf.mxu3 }
 0x207   :  { %v1388_v59 = vpop.eup %1387  ;;  %v990_v18 = vadd.f32 %v989_v17, %v955_v16 }
 0x208   :  { %v1001_v19 = vmul.f32 0.6931472, %v1388_v59 }
 0x209   :  { %1389 = vlog2.f32 %v990_v18 }
 0x20a   :  { %1008 = vxpose.xlu0.b32.cont [5/6] (short) (narrow) %v1001_v19, 40  ;;  %1391 = vrcp.f32 %v1414_v39 }
 0x20f   :  { %v1390_v0 = vpop.eup %1389 }
 0x210   :  { %v1003_v1 = vmul.f32 0.6931472, %v1390_v0  ;;  %v1392_v40 = vpop.eup %1391 }
 0x211   :  { %v1053_v41 = vmul.f32 21.0, %v1392_v40  ;;  %vm1057_vm1 = vweird.f32 %v1392_v40 }
 0x212   :  { %1009 = vxpose.xlu0.b32.end [6/6] (short) (narrow) %v1003_v1, 40 }
 0x213   :  { %v1054_v42 = vsub.f32 1.0, %v1053_v41 }
 0x215   :  { %v1055_v43 = vmul.f32 %v1392_v40, %v1054_v42 }
 0x217   :  { %v1056_v22 = vadd.f32 %v1392_v40, %v1055_v43 }
 0x219   :  { %v2616_v49 = vsel %vm1057_vm1, %v1392_v40, %v1056_v22 }
 0x28e   :  { %v2587_v25 = vpop.trf.xlu0 }
 0x28f   :  { %1164 = vrot.lane.b32.xlu1 %v2587_v25, %s1413_s2  ;;  %v1037_v21 = vsel %vm1036_vm0, %v2587_v25, 0.0 }
 0x296   :  { %v2591_v8 = vpop.trf.xlu0 }
 0x297   :  { %1166 = vrot.lane.b32.xlu1 %v2591_v8, %s1413_s2  ;;  %v1040_v37 = vsel %vm1036_vm0, %v2591_v8, 0.0 }
 0x29e   :  { %v2595_v35 = vpop.trf.xlu0 }
 0x29f   :  { %1168 = vrot.lane.b32.xlu2 %v2595_v35, %s1413_s2  ;;  %v1043_v30 = vsel %vm1036_vm0, %v2595_v35, 0.0 }
 0x2a6   :  { %v2599_v26 = vpop.trf.xlu0 }
 0x2a7   :  { %1170 = vrot.lane.b32.xlu2 %v2599_v26, %s1413_s2  ;;  %v1046_v11 = vsel %vm1036_vm0, %v2599_v26, 0.0 }
 0x2ae   :  { %v2603_v27 = vpop.trf.xlu0 }
 0x2af   :  { %1172 = vrot.lane.b32.xlu1 %v2603_v27, %s1413_s2  ;;  %v1049_v38 = vsel %vm1036_vm0, %v2603_v27, 0.0 }
 0x2f9   :  { %v1169_v29 = vpop.permute.xlu2 %1168 }
 0x2fa   :  { %v1185_v33 = vsel %vm1036_vm0, %v1169_v29, 0.0 }
 0x2fb   :  { %1186 = vadd.xlane.f32.xlu0 %v1185_v33 }
 0x301   :  { %v1165_v44 = vpop.permute.xlu1 %1164  ;;  %v1171_v61 = vpop.permute.xlu2 %1170 }
 0x302   :  { %v1179_v45 = vsel %vm1036_vm0, %v1165_v44, 0.0  ;;  %v1188_v48 = vsel %vm1036_vm0, %v1171_v61, 0.0 }
 0x303   :  { %1180 = vadd.xlane.f32.xlu2 %v1179_v45 }
 0x309   :  { %v1167_v34 = vpop.permute.xlu1 %1166 }
 0x30a   :  { %v1182_v23 = vsel %vm1036_vm0, %v1167_v34, 0.0 }
 0x30b   :  { %1038 = vadd.xlane.f32.xlu2 %v1037_v21  ;;  %1183 = vadd.xlane.f32.xlu1 %v1182_v23 }
 0x313   :  { %1189 = vadd.xlane.f32.xlu2 %v1188_v48  ;;  %1041 = vadd.xlane.f32.xlu1 %v1040_v37 }
 0x321   :  { %v1173_v28 = vpop.permute.xlu1 %1172 }
 0x322   :  { %v1191_v32 = vsel %vm1036_vm0, %v1173_v28, 0.0 }
 0x323   :  { %1192 = vadd.xlane.f32.xlu2 %v1191_v32 }
 0x36e   :  { %v1187_v50 = vpop.xlane.xlu0 %1186 }
 0x36f   :  { %v1196_v62 = vmul.f32 %v1187_v50, %v2616_v49 }
 0x371   :  { %v2627_v53 = vsub.f32 %v2595_v35, %v1196_v62 }
 0x373   :  { %v1206_v20 = vmul.f32 %v2627_v53, %v2627_v53 }
 0x376   :  { %v1181_v4 = vpop.xlane.xlu2 %1180 }
 0x377   :  { %v1194_v60 = vmul.f32 %v1181_v4, %v2616_v49 }
 0x379   :  { %v2620_v51 = vsub.f32 %v2587_v25, %v1194_v60 }
 0x37b   :  { %v1204_v2 = vmul.f32 %v2620_v51, %v2620_v51 }
 0x37d   :  { %1214 = vrot.lane.b32.xlu1 %v1204_v2, %s1413_s2 }
 0x37e   :  { %v1039_v63 = vpop.xlane.xlu2 %1038  ;;  %v1184_v47 = vpop.xlane.xlu1 %1183 }
 0x37f   :  { %v1195_v3 = vmul.f32 %v1184_v47, %v2616_v49  ;;  %v1059_v46 = vmul.f32 %v2616_v49, %v1039_v63 }
 0x381   :  { %v2631_v5 = vsub.f32 %v2591_v8, %v1195_v3  ;;  %v2664_v16 = vsub.f32 %v2587_v25, %v1059_v46 }
 0x383   :  { %v1205_v6 = vmul.f32 %v2631_v5, %v2631_v5  ;;  %v1069_v0 = vmul.f32 %v2664_v16, %v2664_v16 }
 0x385   :  { %1218 = vrot.lane.b32.xlu1 %v1206_v20, %s1413_s2  ;;  %1216 = vrot.lane.b32.xlu2 %v1205_v6, %s1413_s2  ;;  %v1074_v25 = vsel %vm1036_vm0, %v1069_v0, 0.0 }
 0x386   :  { %v1190_v14 = vpop.xlane.xlu2 %1189  ;;  %v1042_v58 = vpop.xlane.xlu1 %1041 }
 0x387   :  { %v1197_v7 = vmul.f32 %v1190_v14, %v2616_v49  ;;  %v1060_v52 = vmul.f32 %v2616_v49, %v1042_v58 }
 0x389   :  { %v2641_v15 = vsub.f32 %v2599_v26, %v1197_v7  ;;  %v2667_v17 = vsub.f32 %v2591_v8, %v1060_v52 }
 0x38b   :  { %v1207_v9 = vmul.f32 %v2641_v15, %v2641_v15  ;;  %v1070_v19 = vmul.f32 %v2667_v17, %v2667_v17 }
 0x38d   :  { %1220 = vrot.lane.b32.xlu2 %v1207_v9, %s1413_s2  ;;  %v1077_v1 = vsel %vm1036_vm0, %v1070_v19, 0.0 }
 0x396   :  { %v1193_v10 = vpop.xlane.xlu2 %1192 }
 0x397   :  { %v1198_v55 = vmul.f32 %v1193_v10, %v2616_v49 }
 0x399   :  { %v2648_v56 = vsub.f32 %v2603_v27, %v1198_v55 }
 0x39b   :  { %v1208_v57 = vmul.f32 %v2648_v56, %v2648_v56 }
 0x39d   :  { %1222 = vrot.lane.b32.xlu1 %v1208_v57, %s1413_s2 }
 0x3b6   :  { %1044 = vadd.xlane.f32.xlu2 %v1043_v30 }
 0x3be   :  { %1050 = vadd.xlane.f32.xlu2 %v1049_v38 }
 0x3c7   :  { %1047 = vadd.xlane.f32.xlu1 %v1046_v11 }
 0x3df   :  { %v1217_v12 = vpop.permute.xlu2 %1216 }
 0x3e0   :  { %v1232_v31 = vsel %vm1036_vm0, %v1217_v12, 0.0 }
 0x3e1   :  { %1233 = vadd.xlane.f32.xlu0 %v1232_v31 }
 0x3e7   :  { %v1221_v54 = vpop.permute.xlu2 %1220 }
 0x3e8   :  { %v1238_v59 = vsel %vm1036_vm0, %v1221_v54, 0.0 }
 0x3ef   :  { %v1215_v13 = vpop.permute.xlu1 %1214 }
 0x3f0   :  { %v1229_v36 = vsel %vm1036_vm0, %v1215_v13, 0.0 }
 0x3f1   :  { %1230 = vadd.xlane.f32.xlu1 %v1229_v36 }
 0x3f7   :  { %v1219_v24 = vpop.permute.xlu1 %1218 }
 0x3f8   :  { %v1235_v18 = vsel %vm1036_vm0, %v1219_v24, 0.0 }
 0x3f9   :  { %1239 = vadd.xlane.f32.xlu1 %v1238_v59  ;;  %1236 = vadd.xlane.f32.xlu2 %v1235_v18 }
 0x401   :  { %1078 = vadd.xlane.f32.xlu1 %v1077_v1  ;;  %1075 = vadd.xlane.f32.xlu2 %v1074_v25 }
 0x40f   :  { %v1223_v8 = vpop.permute.xlu1 %1222 }
 0x410   :  { %v1241_v29 = vsel %vm1036_vm0, %v1223_v8, 0.0 }
 0x411   :  { %1242 = vadd.xlane.f32.xlu0 %v1241_v29 }
 0x429   :  { %v1045_v33 = vpop.xlane.xlu2 %1044 }
 0x42a   :  { %v1061_v44 = vmul.f32 %v2616_v49, %v1045_v33 }
 0x42c   :  { %v2680_v45 = vsub.f32 %v2595_v35, %v1061_v44 }
 0x42e   :  { %v1071_v34 = vmul.f32 %v2680_v45, %v2680_v45 }
 0x430   :  { %v1080_v21 = vsel %vm1036_vm0, %v1071_v34, 0.0 }
 0x431   :  { %v1051_v23 = vpop.xlane.xlu2 %1050  ;;  %1081 = vadd.xlane.f32.xlu0 %v1080_v21 }
 0x432   :  { %v1063_v61 = vmul.f32 %v2616_v49, %v1051_v23 }
 0x434   :  { %v2687_v48 = vsub.f32 %v2603_v27, %v1063_v61 }
 0x436   :  { %v1073_v37 = vmul.f32 %v2687_v48, %v2687_v48 }
 0x438   :  { %v1086_v28 = vsel %vm1036_vm0, %v1073_v37, 0.0 }
 0x439   :  { %1087 = vadd.xlane.f32.xlu1 %v1086_v28 }
 0x43a   :  { %v1048_v35 = vpop.xlane.xlu1 %1047 }
 0x43b   :  { %v1062_v32 = vmul.f32 %v2616_v49, %v1048_v35 }
 0x43d   :  { %v2694_v39 = vsub.f32 %v2599_v26, %v1062_v32 }
 0x43f   :  { %v1072_v40 = vmul.f32 %v2694_v39, %v2694_v39 }
 0x441   :  { %v1083_v41 = vsel %vm1036_vm0, %v1072_v40, 0.0 }
 0x442   :  { %1084 = vadd.xlane.f32.xlu2 %v1083_v41 }
 0x454   :  { %v1234_v27 = vpop.xlane.xlu0 %1233 }
 0x455   :  { %v1245_v42 = vmul.f32 %v1234_v27, %v2616_v49 }
 0x457   :  { %v1250_v43 = vadd.f32 1e-05, %v1245_v42 }
 0x459   :  { %1393 = vrsqrt.f32 %v1250_v43  ;;  %vm1270_vm3 = vweird.f32 %v1250_v43 }
 0x45f   :  { %v1394_v22 = vpop.eup %1393 }
 0x460   :  { %v1265_v4 = vmul.f32 %v1394_v22, %v1250_v43  ;;  %vm1271_vm2 = vweird.f32 %v1394_v22 }
 0x461   :  { %vm1272_vm4 = vmor %vm1270_vm3, %vm1271_vm2 }
 0x462   :  { %v1266_v60 = vmul.f32 %v1394_v22, %v1265_v4 }
 0x464   :  { %v1267_v50 = vmul.f32 0.5, %v1266_v60  ;;  %v1231_v62 = vpop.xlane.xlu1 %1230 }
 0x465   :  { %v1244_v2 = vmul.f32 %v1231_v62, %v2616_v49 }
 0x466   :  { %v1268_v26 = vsub.f32 1.5, %v1267_v50 }
 0x467   :  { %v1249_v63 = vadd.f32 1e-05, %v1244_v2 }
 0x468   :  { %v1269_v47 = vmul.f32 %v1394_v22, %v1268_v26 }
 0x469   :  { %1395 = vrsqrt.f32 %v1249_v63  ;;  %vm1260_vm6 = vweird.f32 %v1249_v63 }
 0x46a   :  { %v1273_v3 = vsel %vm1272_vm4, %v1394_v22, %v1269_v47 }
 0x46b   :  { %v1305_v20 = vmul.f32 %v1273_v3, %v2631_v5 }
 0x46c   :  { %v1237_v6 = vpop.xlane.xlu2 %1236  ;;  %v1240_v14 = vpop.xlane.xlu1 %1239 }
 0x46d   :  { %v1246_v7 = vmul.f32 %v1237_v6, %v2616_v49  ;;  %v1247_v9 = vmul.f32 %v1240_v14, %v2616_v49  ;;  %1316 = vrot.lane.b32.xlu2 %v1305_v20, %s1413_s2 }
 0x46f   :  { %v1396_v10 = vpop.eup %1395  ;;  %v1251_v55 = vadd.f32 1e-05, %v1246_v7  ;;  %v1252_v57 = vadd.f32 1e-05, %v1247_v9 }
 0x470   :  { %v1255_v30 = vmul.f32 %v1396_v10, %v1249_v63  ;;  %vm1261_vm5 = vweird.f32 %v1396_v10 }
 0x471   :  { %1397 = vrsqrt.f32 %v1251_v55  ;;  %vm1262_vm7 = vmor %vm1260_vm6, %vm1261_vm5  ;;  %vm1280_vm10 = vweird.f32 %v1251_v55  ;;  %vm1290_vm12 = vweird.f32 %v1252_v57 }
 0x472   :  { %v1256_v38 = vmul.f32 %v1396_v10, %v1255_v30  ;;  %1399 = vrsqrt.f32 %v1252_v57 }
 0x474   :  { %v1257_v11 = vmul.f32 0.5, %v1256_v38  ;;  %v1076_v12 = vpop.xlane.xlu2 %1075  ;;  %v1079_v31 = vpop.xlane.xlu1 %1078 }
 0x475   :  { %v1089_v5 = vmul.f32 %v1076_v12, %v2616_v49  ;;  %v1090_v58 = vmul.f32 %v1079_v31, %v2616_v49 }
 0x476   :  { %v1258_v13 = vsub.f32 1.5, %v1257_v11 }
 0x477   :  { %v1398_v36 = vpop.eup %1397  ;;  %v1094_v46 = vadd.f32 1e-05, %v1089_v5  ;;  %v1095_v52 = vadd.f32 1e-05, %v1090_v58 }
 0x478   :  { %v1400_v54 = vpop.eup %1399  ;;  %v1275_v24 = vmul.f32 %v1398_v36, %v1251_v55  ;;  %v1259_v59 = vmul.f32 %v1396_v10, %v1258_v13  ;;  %vm1281_vm8 = vweird.f32 %v1398_v36 }
 0x479   :  { %v1285_v18 = vmul.f32 %v1400_v54, %v1252_v57  ;;  %1401 = vrsqrt.f32 %v1094_v46  ;;  %vm1291_vm9 = vweird.f32 %v1400_v54  ;;  %vm1282_vm11 = vmor %vm1280_vm10, %vm1281_vm8  ;;  %vm1105_vm1 = vweird.f32 %v1094_v46 }
 0x47a   :  { %v1276_v19 = vmul.f32 %v1398_v36, %v1275_v24  ;;  %1403 = vrsqrt.f32 %v1095_v52  ;;  %v1263_v0 = vsel %vm1262_vm7, %v1396_v10, %v1259_v59  ;;  %vm1292_vm13 = vmor %vm1290_vm12, %vm1291_vm9  ;;  %vm1115_vm3 = vweird.f32 %v1095_v52 }
 0x47b   :  { %v1286_v1 = vmul.f32 %v1400_v54, %v1285_v18  ;;  %v1304_v25 = vmul.f32 %v1263_v0, %v2620_v51 }
 0x47c   :  { %v1277_v8 = vmul.f32 0.5, %v1276_v19 }
 0x47d   :  { %v1287_v29 = vmul.f32 0.5, %v1286_v1  ;;  %1314 = vrot.lane.b32.xlu0 %v1304_v25, %s1413_s2 }
 0x47e   :  { %v1278_v33 = vsub.f32 1.5, %v1277_v8 }
 0x47f   :  { %v1402_v44 = vpop.eup %1401  ;;  %v1288_v34 = vsub.f32 1.5, %v1287_v29 }
 0x480   :  { %v1404_v21 = vpop.eup %1403  ;;  %v1100_v23 = vmul.f32 %v1402_v44, %v1094_v46  ;;  %v1279_v61 = vmul.f32 %v1398_v36, %v1278_v33  ;;  %vm1106_vm14 = vweird.f32 %v1402_v44 }
 0x481   :  { %v1110_v37 = vmul.f32 %v1404_v21, %v1095_v52  ;;  %v1289_v28 = vmul.f32 %v1400_v54, %v1288_v34  ;;  %vm1116_vm15 = vweird.f32 %v1404_v21  ;;  %vm1107_vm2 = vmor %vm1105_vm1, %vm1106_vm14 }
 0x482   :  { %v1101_v35 = vmul.f32 %v1402_v44, %v1100_v23  ;;  %v1283_v51 = vsel %vm1282_vm11, %v1398_v36, %v1279_v61  ;;  %vm1117_vm4 = vmor %vm1115_vm3, %vm1116_vm15 }
 0x483   :  { %v1111_v32 = vmul.f32 %v1404_v21, %v1110_v37  ;;  %v1306_v40 = vmul.f32 %v1283_v51, %v2627_v53  ;;  %v1293_v41 = vsel %vm1292_vm13, %v1400_v54, %v1289_v28 }
 0x484   :  { %v1102_v27 = vmul.f32 0.5, %v1101_v35  ;;  %v1243_v42 = vpop.xlane.xlu0 %1242  ;;  %v1307_v43 = vmul.f32 %v1293_v41, %v2641_v15 }
 0x485   :  { %v1112_v22 = vmul.f32 0.5, %v1111_v32  ;;  %v1248_v4 = vmul.f32 %v1243_v42, %v2616_v49  ;;  %1318 = vrot.lane.b32.xlu1 %v1306_v40, %s1413_s2 }
 0x486   :  { %v1103_v60 = vsub.f32 1.5, %v1102_v27  ;;  %1320 = vrot.lane.b32.xlu0 %v1307_v43, %s1413_s2 }
 0x487   :  { %v1113_v50 = vsub.f32 1.5, %v1112_v22  ;;  %v1253_v62 = vadd.f32 1e-05, %v1248_v4 }
 0x488   :  { %v1104_v2 = vmul.f32 %v1402_v44, %v1103_v60 }
 0x489   :  { %v1114_v53 = vmul.f32 %v1404_v21, %v1113_v50  ;;  %1405 = vrsqrt.f32 %v1253_v62  ;;  %vm1300_vm6 = vweird.f32 %v1253_v62 }
 0x48a   :  { %v1108_v26 = vsel %vm1107_vm2, %v1402_v44, %v1104_v2 }
 0x48b   :  { %v1149_v15 = vmul.f32 %v1108_v26, %v2664_v16  ;;  %v1118_v63 = vsel %vm1117_vm4, %v1404_v21, %v1114_v53 }
 0x48c   :  { %v1150_v47 = vmul.f32 %v1118_v63, %v2667_v17 }
 0x48d   :  { %1154 = vst.msk [vmem:[%s2767_s3] sm:$0xff] %vm1036_vm0, %v1149_v15 }
 0x48e   :  { %1155 = vst.msk [vmem:[%s2767_s3 + $0x8] sm:$0xff] %vm1036_vm0, %v1150_v47 }
 0x48f   :  { %v1406_v3 = vpop.eup %1405 }
 0x490   :  { %v1295_v20 = vmul.f32 %v1406_v3, %v1253_v62  ;;  %vm1301_vm5 = vweird.f32 %v1406_v3 }
 0x491   :  { %vm1302_vm7 = vmor %vm1300_vm6, %vm1301_vm5 }
 0x492   :  { %v1296_v6 = vmul.f32 %v1406_v3, %v1295_v20 }
 0x494   :  { %v1297_v14 = vmul.f32 0.5, %v1296_v6 }
 0x496   :  { %v1298_v7 = vsub.f32 1.5, %v1297_v14 }
 0x498   :  { %v1299_v16 = vmul.f32 %v1406_v3, %v1298_v7 }
 0x49a   :  { %v1303_v17 = vsel %vm1302_vm7, %v1406_v3, %v1299_v16 }
 0x49b   :  { %v1308_v9 = vmul.f32 %v1303_v17, %v2648_v56 }
 0x49d   :  { %1322 = vrot.lane.b32.xlu2 %v1308_v9, %s1413_s2 }
 0x4a4   :  { %v1082_v10 = vpop.xlane.xlu0 %1081 }
 0x4a5   :  { %v1091_v55 = vmul.f32 %v1082_v10, %v2616_v49 }
 0x4a7   :  { %v1096_v57 = vadd.f32 1e-05, %v1091_v55 }
 0x4a9   :  { %1407 = vrsqrt.f32 %v1096_v57  ;;  %vm1125_vm9 = vweird.f32 %v1096_v57 }
 0x4ac   :  { %v1088_v30 = vpop.xlane.xlu1 %1087 }
 0x4ad   :  { %v1093_v38 = vmul.f32 %v1088_v30, %v2616_v49 }
 0x4af   :  { %v1408_v11 = vpop.eup %1407  ;;  %v1098_v12 = vadd.f32 1e-05, %v1093_v38 }
 0x4b0   :  { %v1120_v31 = vmul.f32 %v1408_v11, %v1096_v57  ;;  %vm1126_vm8 = vweird.f32 %v1408_v11 }
 0x4b1   :  { %1409 = vrsqrt.f32 %v1098_v12  ;;  %vm1127_vm10 = vmor %vm1125_vm9, %vm1126_vm8  ;;  %vm1145_vm12 = vweird.f32 %v1098_v12 }
 0x4b2   :  { %v1121_v5 = vmul.f32 %v1408_v11, %v1120_v31 }
 0x4b4   :  { %v1122_v58 = vmul.f32 0.5, %v1121_v5 }
 0x4b5   :  { %v1085_v13 = vpop.xlane.xlu2 %1084 }
 0x4b6   :  { %v1123_v36 = vsub.f32 1.5, %v1122_v58  ;;  %v1092_v56 = vmul.f32 %v1085_v13, %v2616_v49 }
 0x4b7   :  { %v1410_v46 = vpop.eup %1409 }
 0x4b8   :  { %v1124_v52 = vmul.f32 %v1408_v11, %v1123_v36  ;;  %v1140_v54 = vmul.f32 %v1410_v46, %v1098_v12  ;;  %v1097_v24 = vadd.f32 1e-05, %v1092_v56  ;;  %vm1146_vm11 = vweird.f32 %v1410_v46 }
 0x4b9   :  { %vm1147_vm13 = vmor %vm1145_vm12, %vm1146_vm11 }
 0x4ba   :  { %v1128_v59 = vsel %vm1127_vm10, %v1408_v11, %v1124_v52  ;;  %v1141_v18 = vmul.f32 %v1410_v46, %v1140_v54  ;;  %1411 = vrsqrt.f32 %v1097_v24  ;;  %vm1135_vm15 = vweird.f32 %v1097_v24 }
 0x4bb   :  { %v1151_v19 = vmul.f32 %v1128_v59, %v2680_v45 }
 0x4bc   :  { %v1142_v0 = vmul.f32 0.5, %v1141_v18 }
 0x4bd   :  { %1156 = vst.msk [vmem:[%s2767_s3 + $0x10] sm:$0xff] %vm1036_vm0, %v1151_v19 }
 0x4be   :  { %v1143_v1 = vsub.f32 1.5, %v1142_v0 }
 0x4c0   :  { %v1412_v49 = vpop.eup %1411  ;;  %v1144_v25 = vmul.f32 %v1410_v46, %v1143_v1 }
 0x4c1   :  { %v1130_v8 = vmul.f32 %v1412_v49, %v1097_v24  ;;  %vm1136_vm14 = vweird.f32 %v1412_v49 }
 0x4c2   :  { %v1148_v29 = vsel %vm1147_vm13, %v1410_v46, %v1144_v25  ;;  %vm1137_vm1 = vmor %vm1135_vm15, %vm1136_vm14 }
 0x4c3   :  { %v1153_v33 = vmul.f32 %v1148_v29, %v2687_v48  ;;  %v1131_v44 = vmul.f32 %v1412_v49, %v1130_v8 }
 0x4c5   :  { %1158 = vst.msk [vmem:[%s2767_s3 + $0x20] sm:$0xff] %vm1036_vm0, %v1153_v33  ;;  %v1132_v45 = vmul.f32 0.5, %v1131_v44 }
 0x4c7   :  { %v1133_v34 = vsub.f32 1.5, %v1132_v45  ;;  %v1317_v21 = vpop.permute.xlu2 %1316 }
 0x4c8   :  { %1340 = vst.msk [vmem:[%s2767_s3 + $0x30] sm:$0xff] %vm1036_vm0, %v1317_v21 }
 0x4c9   :  { %v1134_v23 = vmul.f32 %v1412_v49, %v1133_v34 }
 0x4cb   :  { %v1138_v61 = vsel %vm1137_vm1, %v1412_v49, %v1134_v23 }
 0x4cc   :  { %v1152_v48 = vmul.f32 %v1138_v61, %v2694_v39 }
 0x4ce   :  { %1157 = vst.msk [vmem:[%s2767_s3 + $0x18] sm:$0xff] %vm1036_vm0, %v1152_v48 }
 0x4ef   :  { %v1315_v37 = vpop.permute.xlu0 %1314 }
 0x4f0   :  { %1339 = vst.msk [vmem:[%s2767_s3 + $0x28] sm:$0xff] %vm1036_vm0, %v1315_v37 }
 0x4f7   :  { %v1323_v28 = vpop.permute.xlu2 %1322  ;;  %v1319_v35 = vpop.permute.xlu1 %1318 }
 0x4f8   :  { %1343 = vst.msk [vmem:[%s2767_s3 + $0x48] sm:$0xff] %vm1036_vm0, %v1323_v28  ;;  %v1321_v51 = vpop.permute.xlu0 %1320 }
 0x4f9   :  { %1342 = vst.msk [vmem:[%s2767_s3 + $0x40] sm:$0xff] %vm1036_vm0, %v1321_v51 }
 0x4fa   :  { %1341 = vst.msk [vmem:[%s2767_s3 + $0x38] sm:$0xff] %vm1036_vm0, %v1319_v35 }

</bundles_post_ra>
